<compile_context>
chip_gen: v7x
topology: tpu7x:2x2x1
jax: 0.10.0
libtpu: 0.0.40
codegen_flags: <defaults>
</compile_context>

<pallas_src>
import math

import jax
import jax.numpy as jnp
from jax.experimental import pallas as pl
from jax.experimental.pallas import tpu as pltpu

# ---------------- config (mini bert-base-cased stand-in) ----------------
VOCAB = 100
HIDDEN = 32
N_LAYERS = 2
N_HEADS = 2
HEAD_DIM = HIDDEN // N_HEADS
INTERMEDIATE = 64
MAX_POS = 16
N_CLASSES = 3
N_CLASSES_PAD = 128          # lane-dense head output; sliced to N_CLASSES outside
SEQ = 8
BATCH = 2
LN_EPS = 1e-12
_INV_SQRT2 = 0.7071067811865476
_ATTN_SCALE = 1.0 / math.sqrt(HEAD_DIM)


def _layernorm(x, g, b):
    mu = jnp.mean(x, axis=-1, keepdims=True)
    var = jnp.mean(jnp.square(x - mu), axis=-1, keepdims=True)
    return (x - mu) * jax.lax.rsqrt(var + LN_EPS) * g + b


# ---------------- per-layer kernel (grid axis = encoder layer) ----------------
def _bert_layer_kernel(
    emb_ref, mask_ref, emb_ln_g_ref, emb_ln_b_ref,
    wqkv_ref, bqkv_ref, wo_ref, bo_ref, ln1_g_ref, ln1_b_ref,
    wi_ref, bi_ref, wf_ref, bf_ref, ln2_g_ref, ln2_b_ref,
    out_w_ref, out_b_ref,
    logits_ref,
    x_ref, ctx_ref,
):
    l = pl.program_id(0)
    B, S = mask_ref.shape
    H, Dh = HIDDEN, HEAD_DIM

    # ---- first layer step only: embedding LayerNorm into the carried activation ----
    @pl.when(l == 0)
    def _():
        x_ref[...] = _layernorm(emb_ref[...], emb_ln_g_ref[...], emb_ln_b_ref[...])

    x = x_ref[...]                                   # (B*S, H) f32, persists across layers

    # additive attention-mask bias, broadcast in-kernel over heads & query dim
    bias = (1.0 - mask_ref[...]) * (-1e9)            # (B, S_k)
    bias = bias[:, None, :]                          # (B, 1, S_k)

    # ---- fused QKV projection: one bf16 MXU pass, N = 3H ----
    qkv = (jnp.dot(x.astype(jnp.bfloat16), wqkv_ref[...],
                   preferred_element_type=jnp.float32) + bqkv_ref[...])   # (B*S, 3H) f32

    # ---- per-head attention; contexts assembled ONCE into a VMEM scratch ----
    # TODO(synk): at bert-base sizes move heads/KV blocks onto grid axes (flash-style
    #             online softmax) instead of lane-slicing qkv per head and holding the
    #             full (B,S,S) score tensor.
    for h in range(N_HEADS):
        q = qkv[:, h * Dh:(h + 1) * Dh].reshape(B, S, Dh)
        k = qkv[:, H + h * Dh:H + (h + 1) * Dh].reshape(B, S, Dh)
        v = qkv[:, 2 * H + h * Dh:2 * H + (h + 1) * Dh].reshape(B, S, Dh)

        s = (jnp.einsum('bqd,bkd->bqk',
                        q.astype(jnp.bfloat16), k.astype(jnp.bfloat16),
                        preferred_element_type=jnp.float32) * _ATTN_SCALE + bias)
        m = jnp.max(s, axis=-1, keepdims=True)
        p = jnp.exp(s - m)
        p = p * pl.reciprocal(jnp.sum(p, axis=-1, keepdims=True), approx=True)
        ctx = jnp.einsum('bqk,bkd->bqd',
                         p.astype(jnp.bfloat16), v.astype(jnp.bfloat16),
                         preferred_element_type=jnp.float32)
        ctx_ref[:, h * Dh:(h + 1) * Dh] = ctx.reshape(B * S, Dh)

    # ---- merged output projection: single (B*S,H) @ (H,H) matmul (K = H) ----
    attn_out = (jnp.dot(ctx_ref[...].astype(jnp.bfloat16), wo_ref[...],
                        preferred_element_type=jnp.float32) + bo_ref[...])

    # ---- residual + LayerNorm (f32) ----
    x = _layernorm(attn_out + x, ln1_g_ref[...], ln1_b_ref[...])

    # ---- FFN: bf16 operands, f32 accumulate; exact erf-GELU keeps HF-BERT numerics ----
    # (tanh-approx GELU would move the activation to the EUP slot but changes numerics)
    hdn = (jnp.dot(x.astype(jnp.bfloat16), wi_ref[...],
                   preferred_element_type=jnp.float32) + bi_ref[...])
    hdn = 0.5 * hdn * (1.0 + jax.lax.erf(hdn * _INV_SQRT2))
    ffn = (jnp.dot(hdn.astype(jnp.bfloat16), wf_ref[...],
                   preferred_element_type=jnp.float32) + bf_ref[...])
    x = _layernorm(ffn + x, ln2_g_ref[...], ln2_b_ref[...])
    x_ref[...] = x                                   # carry to the next layer step

    # ---- last layer step: CLS pooling + dropout(identity @ eval) + classifier head ----
    @pl.when(l == pl.num_programs(0) - 1)
    def _():
        pooled = x.reshape(B, S, H)[:, 0, :]         # (B, H)
        logits_ref[...] = (jnp.dot(pooled.astype(jnp.bfloat16), out_w_ref[...],
                                   preferred_element_type=jnp.float32)
                           + out_b_ref[...]).astype(logits_ref.dtype)


# ---------------- model glue ----------------
def sentiment_classifier_forward(params, input_ids, attention_mask):
    B, S = input_ids.shape
    BS = B * S
    H, I = HIDDEN, INTERMEDIATE

    # embedding gather (word + position + token-type) stays in plain JAX
    emb = (
        params["word_emb"][input_ids]
        + params["pos_emb"][:S][None, :, :]
        + params["type_emb"][0][None, None, :]
    ).reshape(BS, H).astype(jnp.float32)
    mask_f32 = attention_mask.astype(jnp.float32)

    kernel_args = (
        emb, mask_f32,
        params["emb_ln_g"], params["emb_ln_b"],
        params["wqkv"], params["bqkv"], params["wo"], params["bo"],
        params["ln1_g"], params["ln1_b"],
        params["wi"], params["bi"], params["wf"], params["bf"],
        params["ln2_g"], params["ln2_b"],
        params["out_w_pad"], params["out_b_pad"],
    )

    # advisory cost estimate for XLA's scheduler
    flops = N_LAYERS * (2 * BS * H * 3 * H          # fused QKV
                        + 4 * B * N_HEADS * S * S * HEAD_DIM  # scores + ctx
                        + 2 * BS * H * H            # merged Wo
                        + 4 * BS * H * I)           # FFN
    flops += 2 * B * H * N_CLASSES_PAD              # classifier head
    transcendentals = N_LAYERS * (B * N_HEADS * S * S + BS * I + 4 * BS)
    bytes_accessed = (sum(int(a.size) * a.dtype.itemsize for a in kernel_args)
                      + B * N_CLASSES_PAD * 4)

    grid_spec = pltpu.PrefetchScalarGridSpec(
        num_scalar_prefetch=0,
        grid=(N_LAYERS,),
        in_specs=[
            pl.BlockSpec((BS, H), lambda l: (0, 0)),                 # emb
            pl.BlockSpec((B, S), lambda l: (0, 0)),                  # mask
            pl.BlockSpec((1, H), lambda l: (0, 0)),                  # emb LN gamma
            pl.BlockSpec((1, H), lambda l: (0, 0)),                  # emb LN beta
            pl.BlockSpec((None, H, 3 * H), lambda l: (l, 0, 0)),     # wqkv (bf16)
            pl.BlockSpec((None, 1, 3 * H), lambda l: (l, 0, 0)),     # bqkv
            pl.BlockSpec((None, H, H), lambda l: (l, 0, 0)),         # wo (bf16)
            pl.BlockSpec((None, 1, H), lambda l: (l, 0, 0)),         # bo
            pl.BlockSpec((None, 1, H), lambda l: (l, 0, 0)),         # ln1 gamma
            pl.BlockSpec((None, 1, H), lambda l: (l, 0, 0)),         # ln1 beta
            pl.BlockSpec((None, H, I), lambda l: (l, 0, 0)),         # wi (bf16)
            pl.BlockSpec((None, 1, I), lambda l: (l, 0, 0)),         # bi
            pl.BlockSpec((None, I, H), lambda l: (l, 0, 0)),         # wf (bf16)
            pl.BlockSpec((None, 1, H), lambda l: (l, 0, 0)),         # bf
            pl.BlockSpec((None, 1, H), lambda l: (l, 0, 0)),         # ln2 gamma
            pl.BlockSpec((None, 1, H), lambda l: (l, 0, 0)),         # ln2 beta
            pl.BlockSpec((H, N_CLASSES_PAD), lambda l: (0, 0)),      # classifier W (bf16)
            pl.BlockSpec((1, N_CLASSES_PAD), lambda l: (0, 0)),      # classifier b
        ],
        out_specs=pl.BlockSpec((B, N_CLASSES_PAD), lambda l: (0, 0)),
        scratch_shapes=[
            pltpu.VMEM((BS, H), jnp.float32),    # carried activation x
            pltpu.VMEM((BS, H), jnp.float32),    # assembled per-head contexts
        ],
    )

    logits_pad = pl.pallas_call(
        _bert_layer_kernel,
        out_shape=jax.ShapeDtypeStruct((B, N_CLASSES_PAD), jnp.float32),
        grid_spec=grid_spec,
        compiler_params=pltpu.CompilerParams(
            dimension_semantics=("arbitrary",),      # layers are sequential (carried x)
            vmem_limit_bytes=32 * 1024 * 1024,
        ),
        cost_estimate=pl.CostEstimate(
            flops=flops,
            transcendentals=transcendentals,
            bytes_accessed=bytes_accessed,
        ),
    )(*kernel_args)
    return logits_pad[:, :N_CLASSES]


def init_params(key):
    keys = iter(jax.random.split(key, 32))

    def nrm(shape, dtype=jnp.float32):
        return (0.02 * jax.random.normal(next(keys), shape)).astype(dtype)

    def zeros(shape, dtype=jnp.float32):
        return jnp.zeros(shape, dtype)

    def ones(shape, dtype=jnp.float32):
        return jnp.ones(shape, dtype)

    L, H, I = N_LAYERS, HIDDEN, INTERMEDIATE
    out_w = nrm((H, N_CLASSES))
    out_b = zeros((N_CLASSES,))
    return {
        # embeddings stay f32 (gather + LN statistics outside / at top of kernel)
        "word_emb": nrm((VOCAB, H)),
        "pos_emb": nrm((MAX_POS, H)),
        "type_emb": nrm((2, H)),
        "emb_ln_g": ones((1, H)),
        "emb_ln_b": zeros((1, H)),
        # per-layer weights stacked over the layer axis (streamed one layer at a time);
        # matmul weights in bf16, biases/LayerNorm params in f32
        "wqkv": nrm((L, H, 3 * H), jnp.bfloat16),
        "bqkv": zeros((L, 1, 3 * H)),
        "wo": nrm((L, H, H), jnp.bfloat16),
        "bo": zeros((L, 1, H)),
        "ln1_g": ones((L, 1, H)),
        "ln1_b": zeros((L, 1, H)),
        "wi": nrm((L, H, I), jnp.bfloat16),
        "bi": zeros((L, 1, I)),
        "wf": nrm((L, I, H), jnp.bfloat16),
        "bf": zeros((L, 1, H)),
        "ln2_g": ones((L, 1, H)),
        "ln2_b": zeros((L, 1, H)),
        # classifier head padded to a lane-dense 128-wide output (sliced after the call)
        "out_w_pad": jnp.zeros((H, N_CLASSES_PAD), jnp.float32)
                        .at[:, :N_CLASSES].set(out_w).astype(jnp.bfloat16),
        "out_b_pad": jnp.zeros((1, N_CLASSES_PAD), jnp.float32)
                        .at[:, :N_CLASSES].set(out_b),
    }


if __name__ == "__main__":
    key = jax.random.PRNGKey(0)
    pkey, ikey = jax.random.split(key)
    params = init_params(pkey)

    input_ids = jax.random.randint(ikey, (BATCH, SEQ), 0, VOCAB, dtype=jnp.int32)
    attention_mask = jnp.array(
        [[1] * SEQ, [1] * (SEQ - 2) + [0, 0]], dtype=jnp.int32
    )

    fwd = jax.jit(sentiment_classifier_forward)
    logits = jax.block_until_ready(fwd(params, input_ids, attention_mask))
    assert logits.shape == (BATCH, N_CLASSES)
    assert bool(jnp.all(jnp.isfinite(logits)))
    print("KERNEL_OK")
</pallas_src>

<mosaic_0001>
module attributes {stable_mosaic.version = 11 : i64} {
  func.func @_bert_layer_kernel(%arg0: i32, %arg1: memref<16x32xf32, #tpu.memory_space<vmem>>, %arg2: memref<2x8xf32, #tpu.memory_space<vmem>>, %arg3: memref<1x32xf32, #tpu.memory_space<vmem>>, %arg4: memref<1x32xf32, #tpu.memory_space<vmem>>, %arg5: memref<1x32x96xbf16, #tpu.memory_space<vmem>>, %arg6: memref<1x1x96xf32, #tpu.memory_space<vmem>>, %arg7: memref<1x32x32xbf16, #tpu.memory_space<vmem>>, %arg8: memref<1x1x32xf32, #tpu.memory_space<vmem>>, %arg9: memref<1x1x32xf32, #tpu.memory_space<vmem>>, %arg10: memref<1x1x32xf32, #tpu.memory_space<vmem>>, %arg11: memref<1x32x64xbf16, #tpu.memory_space<vmem>>, %arg12: memref<1x1x64xf32, #tpu.memory_space<vmem>>, %arg13: memref<1x64x32xbf16, #tpu.memory_space<vmem>>, %arg14: memref<1x1x32xf32, #tpu.memory_space<vmem>>, %arg15: memref<1x1x32xf32, #tpu.memory_space<vmem>>, %arg16: memref<1x1x32xf32, #tpu.memory_space<vmem>>, %arg17: memref<32x128xbf16, #tpu.memory_space<vmem>>, %arg18: memref<1x128xf32, #tpu.memory_space<vmem>>, %arg19: memref<2x128xf32, #tpu.memory_space<vmem>>, %arg20: memref<16x32xf32, #tpu.memory_space<vmem>>, %arg21: memref<16x32xf32, #tpu.memory_space<vmem>>) attributes {dimension_semantics = [#tpu.dimension_semantics<arbitrary>], iteration_bounds = array<i64: 2>, scalar_prefetch = 0 : i64, scratch_operands = 2 : i64, tpu.core_type = #tpu.core_type<tc>, window_params = [{pipeline_mode = #tpu.pipeline_mode<synchronous>, transform_indices = @transform_0, window_bounds = array<i64: 16, 32>}, {pipeline_mode = #tpu.pipeline_mode<synchronous>, transform_indices = @transform_1, window_bounds = array<i64: 2, 8>}, {pipeline_mode = #tpu.pipeline_mode<synchronous>, transform_indices = @transform_2, window_bounds = array<i64: 1, 32>}, {pipeline_mode = #tpu.pipeline_mode<synchronous>, transform_indices = @transform_3, window_bounds = array<i64: 1, 32>}, {transform_indices = @transform_4, window_bounds = array<i64: 1, 32, 96>}, {transform_indices = @transform_5, window_bounds = array<i64: 1, 1, 96>}, {transform_indices = @transform_6, window_bounds = array<i64: 1, 32, 32>}, {transform_indices = @transform_7, window_bounds = array<i64: 1, 1, 32>}, {transform_indices = @transform_8, window_bounds = array<i64: 1, 1, 32>}, {transform_indices = @transform_9, window_bounds = array<i64: 1, 1, 32>}, {transform_indices = @transform_10, window_bounds = array<i64: 1, 32, 64>}, {transform_indices = @transform_11, window_bounds = array<i64: 1, 1, 64>}, {transform_indices = @transform_12, window_bounds = array<i64: 1, 64, 32>}, {transform_indices = @transform_13, window_bounds = array<i64: 1, 1, 32>}, {transform_indices = @transform_14, window_bounds = array<i64: 1, 1, 32>}, {transform_indices = @transform_15, window_bounds = array<i64: 1, 1, 32>}, {pipeline_mode = #tpu.pipeline_mode<synchronous>, transform_indices = @transform_16, window_bounds = array<i64: 32, 128>}, {pipeline_mode = #tpu.pipeline_mode<synchronous>, transform_indices = @transform_17, window_bounds = array<i64: 1, 128>}, {pipeline_mode = #tpu.pipeline_mode<synchronous>, transform_indices = @transform_18, window_bounds = array<i64: 2, 128>}]} {
    %c0_i32 = arith.constant 0 : i32
    %0 = arith.cmpi eq, %arg0, %c0_i32 : i32
    %1 = arith.extui %0 : i1 to i32
    %c0_i32_0 = arith.constant 0 : i32
    %2 = arith.cmpi ne, %1, %c0_i32_0 : i32
    scf.if %2 {
      %c0_76 = arith.constant 0 : index
      %c0_77 = arith.constant 0 : index
      %165 = vector.load %arg1[%c0_76, %c0_77] : memref<16x32xf32, #tpu.memory_space<vmem>>, vector<16x32xf32>
      %c0_78 = arith.constant 0 : index
      %c0_79 = arith.constant 0 : index
      %166 = vector.load %arg3[%c0_78, %c0_79] : memref<1x32xf32, #tpu.memory_space<vmem>>, vector<1x32xf32>
      %c0_80 = arith.constant 0 : index
      %c0_81 = arith.constant 0 : index
      %167 = vector.load %arg4[%c0_80, %c0_81] : memref<1x32xf32, #tpu.memory_space<vmem>>, vector<1x32xf32>
      %cst_82 = arith.constant dense<0.000000e+00> : vector<16xf32>
      %168 = vector.multi_reduction <add>, %165, %cst_82 [1] : vector<16x32xf32> to vector<16xf32>
      %169 = vector.shape_cast %168 : vector<16xf32> to vector<16x1xf32>
      %cst_83 = arith.constant 3.200000e+01 : f32
      %170 = vector.broadcast %cst_83 : f32 to vector<16x1xf32>
      %171 = arith.divf %169, %170 : vector<16x1xf32>
      %172 = vector.broadcast %171 : vector<16x1xf32> to vector<16x32xf32>
      %173 = arith.subf %165, %172 : vector<16x32xf32>
      %174 = arith.mulf %173, %173 : vector<16x32xf32>
      %cst_84 = arith.constant dense<0.000000e+00> : vector<16xf32>
      %175 = vector.multi_reduction <add>, %174, %cst_84 [1] : vector<16x32xf32> to vector<16xf32>
      %176 = vector.shape_cast %175 : vector<16xf32> to vector<16x1xf32>
      %cst_85 = arith.constant 3.200000e+01 : f32
      %177 = vector.broadcast %cst_85 : f32 to vector<16x1xf32>
      %178 = arith.divf %176, %177 : vector<16x1xf32>
      %179 = vector.broadcast %171 : vector<16x1xf32> to vector<16x32xf32>
      %180 = arith.subf %165, %179 : vector<16x32xf32>
      %cst_86 = arith.constant 9.99999996E-13 : f32
      %181 = vector.broadcast %cst_86 : f32 to vector<16x1xf32>
      %182 = arith.addf %178, %181 : vector<16x1xf32>
      %183 = math.rsqrt %182 : vector<16x1xf32>
      %184 = vector.broadcast %183 : vector<16x1xf32> to vector<16x32xf32>
      %185 = arith.mulf %180, %184 : vector<16x32xf32>
      %186 = vector.broadcast %166 : vector<1x32xf32> to vector<16x32xf32>
      %187 = arith.mulf %185, %186 : vector<16x32xf32>
      %188 = vector.broadcast %167 : vector<1x32xf32> to vector<16x32xf32>
      %189 = arith.addf %187, %188 : vector<16x32xf32>
      %c0_87 = arith.constant 0 : index
      %c0_88 = arith.constant 0 : index
      %190 = vector.load %arg20[%c0_87, %c0_88] : memref<16x32xf32, #tpu.memory_space<vmem>>, vector<16x32xf32>
      tpu.vector_store %arg20[%c0_87, %c0_88], %189 {strides = array<i32>} : memref<16x32xf32, #tpu.memory_space<vmem>>, vector<16x32xf32>,
    } else {
    }
    %c0 = arith.constant 0 : index
    %c0_1 = arith.constant 0 : index
    %3 = vector.load %arg20[%c0, %c0_1] : memref<16x32xf32, #tpu.memory_space<vmem>>, vector<16x32xf32>
    %c0_2 = arith.constant 0 : index
    %c0_3 = arith.constant 0 : index
    %4 = vector.load %arg2[%c0_2, %c0_3] : memref<2x8xf32, #tpu.memory_space<vmem>>, vector<2x8xf32>
    %cst = arith.constant 1.000000e+00 : f32
    %5 = vector.broadcast %cst : f32 to vector<2x8xf32>
    %6 = arith.subf %5, %4 : vector<2x8xf32>
    %cst_4 = arith.constant -1.000000e+09 : f32
    %7 = vector.broadcast %cst_4 : f32 to vector<2x8xf32>
    %8 = arith.mulf %6, %7 : vector<2x8xf32>
    %9 = vector.shape_cast %8 : vector<2x8xf32> to vector<2x1x8xf32>
    %10 = arith.truncf %3 : vector<16x32xf32> to vector<16x32xbf16>
    %c0_5 = arith.constant 0 : index
    %c0_6 = arith.constant 0 : index
    %c0_7 = arith.constant 0 : index
    %11 = vector.load %arg5[%c0_5, %c0_6, %c0_7] : memref<1x32x96xbf16, #tpu.memory_space<vmem>>, vector<1x32x96xbf16>
    %12 = vector.shape_cast %11 : vector<1x32x96xbf16> to vector<32x96xbf16>
    %cst_8 = arith.constant dense<0.000000e+00> : vector<16x96xf32>
    %13 = tpu.matmul %10, %12, %cst_8 {dimension_numbers = #tpu.dot_dimension_numbers<[1], [0], [0], [1], [0, 0, 1, 1], [], []>} : vector<16x32xbf16>, vector<32x96xbf16>, vector<16x96xf32> -> vector<16x96xf32>
    %c0_9 = arith.constant 0 : index
    %c0_10 = arith.constant 0 : index
    %c0_11 = arith.constant 0 : index
    %14 = vector.load %arg6[%c0_9, %c0_10, %c0_11] : memref<1x1x96xf32, #tpu.memory_space<vmem>>, vector<1x1x96xf32>
    %15 = vector.shape_cast %14 : vector<1x1x96xf32> to vector<1x96xf32>
    %16 = vector.broadcast %15 : vector<1x96xf32> to vector<16x96xf32>
    %17 = arith.addf %13, %16 : vector<16x96xf32>
    %18 = vector.extract_strided_slice %17 {offsets = [0, 0], sizes = [16, 16], strides = [1, 1]} : vector<16x96xf32> to vector<16x16xf32>
    %19 = vector.shape_cast %18 : vector<16x16xf32> to vector<2x8x16xf32>
    %20 = vector.extract_strided_slice %17 {offsets = [0, 32], sizes = [16, 16], strides = [1, 1]} : vector<16x96xf32> to vector<16x16xf32>
    %21 = vector.shape_cast %20 : vector<16x16xf32> to vector<2x8x16xf32>
    %22 = vector.extract_strided_slice %17 {offsets = [0, 64], sizes = [16, 16], strides = [1, 1]} : vector<16x96xf32> to vector<16x16xf32>
    %23 = vector.shape_cast %22 : vector<16x16xf32> to vector<2x8x16xf32>
    %24 = arith.truncf %19 : vector<2x8x16xf32> to vector<2x8x16xbf16>
    %25 = arith.truncf %21 : vector<2x8x16xf32> to vector<2x8x16xbf16>
    "tpu.trace_start"() <{level = 10 : i32, message = "bqd,bkd->bqk"}> : () -> ()
    %cst_12 = arith.constant dense<0.000000e+00> : vector<2x8x8xf32>
    %26 = tpu.matmul %24, %25, %cst_12 {dimension_numbers = #tpu.dot_dimension_numbers<[2], [2], [1], [1], [0, 0, 0, 1, 1, 1], [0], [0]>} : vector<2x8x16xbf16>, vector<2x8x16xbf16>, vector<2x8x8xf32> -> vector<2x8x8xf32>
    "tpu.trace_stop"() : () -> ()
    %cst_13 = arith.constant 2.500000e-01 : f32
    %27 = vector.broadcast %cst_13 : f32 to vector<2x8x8xf32>
    %28 = arith.mulf %26, %27 : vector<2x8x8xf32>
    %29 = vector.broadcast %9 : vector<2x1x8xf32> to vector<2x8x8xf32>
    %30 = arith.addf %28, %29 : vector<2x8x8xf32>
    %cst_14 = arith.constant dense<0xFF800000> : vector<2x8xf32>
    %31 = vector.multi_reduction <maximumf>, %30, %cst_14 [2] : vector<2x8x8xf32> to vector<2x8xf32>
    %32 = vector.shape_cast %31 : vector<2x8xf32> to vector<2x8x1xf32>
    %33 = vector.broadcast %32 : vector<2x8x1xf32> to vector<2x8x8xf32>
    %34 = arith.subf %30, %33 : vector<2x8x8xf32>
    %35 = math.exp %34 : vector<2x8x8xf32>
    %cst_15 = arith.constant dense<0.000000e+00> : vector<2x8xf32>
    %36 = vector.multi_reduction <add>, %35, %cst_15 [2] : vector<2x8x8xf32> to vector<2x8xf32>
    %37 = vector.shape_cast %36 : vector<2x8xf32> to vector<2x8x1xf32>
    %38 = tpu.reciprocal %37 {approx = true} : vector<2x8x1xf32> -> vector<2x8x1xf32>
    %39 = vector.broadcast %38 : vector<2x8x1xf32> to vector<2x8x8xf32>
    %40 = arith.mulf %35, %39 : vector<2x8x8xf32>
    %41 = arith.truncf %40 : vector<2x8x8xf32> to vector<2x8x8xbf16>
    %42 = arith.truncf %23 : vector<2x8x16xf32> to vector<2x8x16xbf16>
    "tpu.trace_start"() <{level = 10 : i32, message = "bqk,bkd->bqd"}> : () -> ()
    %cst_16 = arith.constant dense<0.000000e+00> : vector<2x8x16xf32>
    %43 = tpu.matmul %41, %42, %cst_16 {dimension_numbers = #tpu.dot_dimension_numbers<[2], [1], [1], [2], [0, 0, 0, 1, 1, 2], [0], [0]>} : vector<2x8x8xbf16>, vector<2x8x16xbf16>, vector<2x8x16xf32> -> vector<2x8x16xf32>
    "tpu.trace_stop"() : () -> ()
    %44 = vector.shape_cast %43 : vector<2x8x16xf32> to vector<16x16xf32>
    %c0_17 = arith.constant 0 : index
    %c0_18 = arith.constant 0 : index
    %45 = vector.load %arg21[%c0_17, %c0_18] : memref<16x32xf32, #tpu.memory_space<vmem>>, vector<16x16xf32>
    tpu.vector_store %arg21[%c0_17, %c0_18], %44 {strides = array<i32>} : memref<16x32xf32, #tpu.memory_space<vmem>>, vector<16x16xf32>,
    %46 = vector.extract_strided_slice %17 {offsets = [0, 16], sizes = [16, 16], strides = [1, 1]} : vector<16x96xf32> to vector<16x16xf32>
    %47 = vector.shape_cast %46 : vector<16x16xf32> to vector<2x8x16xf32>
    %48 = vector.extract_strided_slice %17 {offsets = [0, 48], sizes = [16, 16], strides = [1, 1]} : vector<16x96xf32> to vector<16x16xf32>
    %49 = vector.shape_cast %48 : vector<16x16xf32> to vector<2x8x16xf32>
    %50 = vector.extract_strided_slice %17 {offsets = [0, 80], sizes = [16, 16], strides = [1, 1]} : vector<16x96xf32> to vector<16x16xf32>
    %51 = vector.shape_cast %50 : vector<16x16xf32> to vector<2x8x16xf32>
    %52 = arith.truncf %47 : vector<2x8x16xf32> to vector<2x8x16xbf16>
    %53 = arith.truncf %49 : vector<2x8x16xf32> to vector<2x8x16xbf16>
    "tpu.trace_start"() <{level = 10 : i32, message = "bqd,bkd->bqk"}> : () -> ()
    %cst_19 = arith.constant dense<0.000000e+00> : vector<2x8x8xf32>
    %54 = tpu.matmul %52, %53, %cst_19 {dimension_numbers = #tpu.dot_dimension_numbers<[2], [2], [1], [1], [0, 0, 0, 1, 1, 1], [0], [0]>} : vector<2x8x16xbf16>, vector<2x8x16xbf16>, vector<2x8x8xf32> -> vector<2x8x8xf32>
    "tpu.trace_stop"() : () -> ()
    %cst_20 = arith.constant 2.500000e-01 : f32
    %55 = vector.broadcast %cst_20 : f32 to vector<2x8x8xf32>
    %56 = arith.mulf %54, %55 : vector<2x8x8xf32>
    %57 = vector.broadcast %9 : vector<2x1x8xf32> to vector<2x8x8xf32>
    %58 = arith.addf %56, %57 : vector<2x8x8xf32>
    %cst_21 = arith.constant dense<0xFF800000> : vector<2x8xf32>
    %59 = vector.multi_reduction <maximumf>, %58, %cst_21 [2] : vector<2x8x8xf32> to vector<2x8xf32>
    %60 = vector.shape_cast %59 : vector<2x8xf32> to vector<2x8x1xf32>
    %61 = vector.broadcast %60 : vector<2x8x1xf32> to vector<2x8x8xf32>
    %62 = arith.subf %58, %61 : vector<2x8x8xf32>
    %63 = math.exp %62 : vector<2x8x8xf32>
    %cst_22 = arith.constant dense<0.000000e+00> : vector<2x8xf32>
    %64 = vector.multi_reduction <add>, %63, %cst_22 [2] : vector<2x8x8xf32> to vector<2x8xf32>
    %65 = vector.shape_cast %64 : vector<2x8xf32> to vector<2x8x1xf32>
    %66 = tpu.reciprocal %65 {approx = true} : vector<2x8x1xf32> -> vector<2x8x1xf32>
    %67 = vector.broadcast %66 : vector<2x8x1xf32> to vector<2x8x8xf32>
    %68 = arith.mulf %63, %67 : vector<2x8x8xf32>
    %69 = arith.truncf %68 : vector<2x8x8xf32> to vector<2x8x8xbf16>
    %70 = arith.truncf %51 : vector<2x8x16xf32> to vector<2x8x16xbf16>
    "tpu.trace_start"() <{level = 10 : i32, message = "bqk,bkd->bqd"}> : () -> ()
    %cst_23 = arith.constant dense<0.000000e+00> : vector<2x8x16xf32>
    %71 = tpu.matmul %69, %70, %cst_23 {dimension_numbers = #tpu.dot_dimension_numbers<[2], [1], [1], [2], [0, 0, 0, 1, 1, 2], [0], [0]>} : vector<2x8x8xbf16>, vector<2x8x16xbf16>, vector<2x8x16xf32> -> vector<2x8x16xf32>
    "tpu.trace_stop"() : () -> ()
    %72 = vector.shape_cast %71 : vector<2x8x16xf32> to vector<16x16xf32>
    %c0_24 = arith.constant 0 : index
    %c16 = arith.constant 16 : index
    %73 = vector.load %arg21[%c0_24, %c16] : memref<16x32xf32, #tpu.memory_space<vmem>>, vector<16x16xf32>
    tpu.vector_store %arg21[%c0_24, %c16], %72 {strides = array<i32>} : memref<16x32xf32, #tpu.memory_space<vmem>>, vector<16x16xf32>,
    %c0_25 = arith.constant 0 : index
    %c0_26 = arith.constant 0 : index
    %74 = vector.load %arg21[%c0_25, %c0_26] : memref<16x32xf32, #tpu.memory_space<vmem>>, vector<16x32xf32>
    %75 = arith.truncf %74 : vector<16x32xf32> to vector<16x32xbf16>
    %c0_27 = arith.constant 0 : index
    %c0_28 = arith.constant 0 : index
    %c0_29 = arith.constant 0 : index
    %76 = vector.load %arg7[%c0_27, %c0_28, %c0_29] : memref<1x32x32xbf16, #tpu.memory_space<vmem>>, vector<1x32x32xbf16>
    %77 = vector.shape_cast %76 : vector<1x32x32xbf16> to vector<32x32xbf16>
    %cst_30 = arith.constant dense<0.000000e+00> : vector<16x32xf32>
    %78 = tpu.matmul %75, %77, %cst_30 {dimension_numbers = #tpu.dot_dimension_numbers<[1], [0], [0], [1], [0, 0, 1, 1], [], []>} : vector<16x32xbf16>, vector<32x32xbf16>, vector<16x32xf32> -> vector<16x32xf32>
    %c0_31 = arith.constant 0 : index
    %c0_32 = arith.constant 0 : index
    %c0_33 = arith.constant 0 : index
    %79 = vector.load %arg8[%c0_31, %c0_32, %c0_33] : memref<1x1x32xf32, #tpu.memory_space<vmem>>, vector<1x1x32xf32>
    %80 = vector.shape_cast %79 : vector<1x1x32xf32> to vector<1x32xf32>
    %81 = vector.broadcast %80 : vector<1x32xf32> to vector<16x32xf32>
    %82 = arith.addf %78, %81 : vector<16x32xf32>
    %83 = arith.addf %82, %3 : vector<16x32xf32>
    %c0_34 = arith.constant 0 : index
    %c0_35 = arith.constant 0 : index
    %c0_36 = arith.constant 0 : index
    %84 = vector.load %arg9[%c0_34, %c0_35, %c0_36] : memref<1x1x32xf32, #tpu.memory_space<vmem>>, vector<1x1x32xf32>
    %85 = vector.shape_cast %84 : vector<1x1x32xf32> to vector<1x32xf32>
    %c0_37 = arith.constant 0 : index
    %c0_38 = arith.constant 0 : index
    %c0_39 = arith.constant 0 : index
    %86 = vector.load %arg10[%c0_37, %c0_38, %c0_39] : memref<1x1x32xf32, #tpu.memory_space<vmem>>, vector<1x1x32xf32>
    %87 = vector.shape_cast %86 : vector<1x1x32xf32> to vector<1x32xf32>
    %cst_40 = arith.constant dense<0.000000e+00> : vector<16xf32>
    %88 = vector.multi_reduction <add>, %83, %cst_40 [1] : vector<16x32xf32> to vector<16xf32>
    %89 = vector.shape_cast %88 : vector<16xf32> to vector<16x1xf32>
    %cst_41 = arith.constant 3.200000e+01 : f32
    %90 = vector.broadcast %cst_41 : f32 to vector<16x1xf32>
    %91 = arith.divf %89, %90 : vector<16x1xf32>
    %92 = vector.broadcast %91 : vector<16x1xf32> to vector<16x32xf32>
    %93 = arith.subf %83, %92 : vector<16x32xf32>
    %94 = arith.mulf %93, %93 : vector<16x32xf32>
    %cst_42 = arith.constant dense<0.000000e+00> : vector<16xf32>
    %95 = vector.multi_reduction <add>, %94, %cst_42 [1] : vector<16x32xf32> to vector<16xf32>
    %96 = vector.shape_cast %95 : vector<16xf32> to vector<16x1xf32>
    %cst_43 = arith.constant 3.200000e+01 : f32
    %97 = vector.broadcast %cst_43 : f32 to vector<16x1xf32>
    %98 = arith.divf %96, %97 : vector<16x1xf32>
    %99 = vector.broadcast %91 : vector<16x1xf32> to vector<16x32xf32>
    %100 = arith.subf %83, %99 : vector<16x32xf32>
    %cst_44 = arith.constant 9.99999996E-13 : f32
    %101 = vector.broadcast %cst_44 : f32 to vector<16x1xf32>
    %102 = arith.addf %98, %101 : vector<16x1xf32>
    %103 = math.rsqrt %102 : vector<16x1xf32>
    %104 = vector.broadcast %103 : vector<16x1xf32> to vector<16x32xf32>
    %105 = arith.mulf %100, %104 : vector<16x32xf32>
    %106 = vector.broadcast %85 : vector<1x32xf32> to vector<16x32xf32>
    %107 = arith.mulf %105, %106 : vector<16x32xf32>
    %108 = vector.broadcast %87 : vector<1x32xf32> to vector<16x32xf32>
    %109 = arith.addf %107, %108 : vector<16x32xf32>
    %110 = arith.truncf %109 : vector<16x32xf32> to vector<16x32xbf16>
    %c0_45 = arith.constant 0 : index
    %c0_46 = arith.constant 0 : index
    %c0_47 = arith.constant 0 : index
    %111 = vector.load %arg11[%c0_45, %c0_46, %c0_47] : memref<1x32x64xbf16, #tpu.memory_space<vmem>>, vector<1x32x64xbf16>
    %112 = vector.shape_cast %111 : vector<1x32x64xbf16> to vector<32x64xbf16>
    %cst_48 = arith.constant dense<0.000000e+00> : vector<16x64xf32>
    %113 = tpu.matmul %110, %112, %cst_48 {dimension_numbers = #tpu.dot_dimension_numbers<[1], [0], [0], [1], [0, 0, 1, 1], [], []>} : vector<16x32xbf16>, vector<32x64xbf16>, vector<16x64xf32> -> vector<16x64xf32>
    %c0_49 = arith.constant 0 : index
    %c0_50 = arith.constant 0 : index
    %c0_51 = arith.constant 0 : index
    %114 = vector.load %arg12[%c0_49, %c0_50, %c0_51] : memref<1x1x64xf32, #tpu.memory_space<vmem>>, vector<1x1x64xf32>
    %115 = vector.shape_cast %114 : vector<1x1x64xf32> to vector<1x64xf32>
    %116 = vector.broadcast %115 : vector<1x64xf32> to vector<16x64xf32>
    %117 = arith.addf %113, %116 : vector<16x64xf32>
    %cst_52 = arith.constant 5.000000e-01 : f32
    %118 = vector.broadcast %cst_52 : f32 to vector<16x64xf32>
    %119 = arith.mulf %118, %117 : vector<16x64xf32>
    %cst_53 = arith.constant 0.707106769 : f32
    %120 = vector.broadcast %cst_53 : f32 to vector<16x64xf32>
    %121 = arith.mulf %117, %120 : vector<16x64xf32>
    %122 = math.erf %121 : vector<16x64xf32>
    %cst_54 = arith.constant 1.000000e+00 : f32
    %123 = vector.broadcast %cst_54 : f32 to vector<16x64xf32>
    %124 = arith.addf %123, %122 : vector<16x64xf32>
    %125 = arith.mulf %119, %124 : vector<16x64xf32>
    %126 = arith.truncf %125 : vector<16x64xf32> to vector<16x64xbf16>
    %c0_55 = arith.constant 0 : index
    %c0_56 = arith.constant 0 : index
    %c0_57 = arith.constant 0 : index
    %127 = vector.load %arg13[%c0_55, %c0_56, %c0_57] : memref<1x64x32xbf16, #tpu.memory_space<vmem>>, vector<1x64x32xbf16>
    %128 = vector.shape_cast %127 : vector<1x64x32xbf16> to vector<64x32xbf16>
    %cst_58 = arith.constant dense<0.000000e+00> : vector<16x32xf32>
    %129 = tpu.matmul %126, %128, %cst_58 {dimension_numbers = #tpu.dot_dimension_numbers<[1], [0], [0], [1], [0, 0, 1, 1], [], []>} : vector<16x64xbf16>, vector<64x32xbf16>, vector<16x32xf32> -> vector<16x32xf32>
    %c0_59 = arith.constant 0 : index
    %c0_60 = arith.constant 0 : index
    %c0_61 = arith.constant 0 : index
    %130 = vector.load %arg14[%c0_59, %c0_60, %c0_61] : memref<1x1x32xf32, #tpu.memory_space<vmem>>, vector<1x1x32xf32>
    %131 = vector.shape_cast %130 : vector<1x1x32xf32> to vector<1x32xf32>
    %132 = vector.broadcast %131 : vector<1x32xf32> to vector<16x32xf32>
    %133 = arith.addf %129, %132 : vector<16x32xf32>
    %134 = arith.addf %133, %109 : vector<16x32xf32>
    %c0_62 = arith.constant 0 : index
    %c0_63 = arith.constant 0 : index
    %c0_64 = arith.constant 0 : index
    %135 = vector.load %arg15[%c0_62, %c0_63, %c0_64] : memref<1x1x32xf32, #tpu.memory_space<vmem>>, vector<1x1x32xf32>
    %136 = vector.shape_cast %135 : vector<1x1x32xf32> to vector<1x32xf32>
    %c0_65 = arith.constant 0 : index
    %c0_66 = arith.constant 0 : index
    %c0_67 = arith.constant 0 : index
    %137 = vector.load %arg16[%c0_65, %c0_66, %c0_67] : memref<1x1x32xf32, #tpu.memory_space<vmem>>, vector<1x1x32xf32>
    %138 = vector.shape_cast %137 : vector<1x1x32xf32> to vector<1x32xf32>
    %cst_68 = arith.constant dense<0.000000e+00> : vector<16xf32>
    %139 = vector.multi_reduction <add>, %134, %cst_68 [1] : vector<16x32xf32> to vector<16xf32>
    %140 = vector.shape_cast %139 : vector<16xf32> to vector<16x1xf32>
    %cst_69 = arith.constant 3.200000e+01 : f32
    %141 = vector.broadcast %cst_69 : f32 to vector<16x1xf32>
    %142 = arith.divf %140, %141 : vector<16x1xf32>
    %143 = vector.broadcast %142 : vector<16x1xf32> to vector<16x32xf32>
    %144 = arith.subf %134, %143 : vector<16x32xf32>
    %145 = arith.mulf %144, %144 : vector<16x32xf32>
    %cst_70 = arith.constant dense<0.000000e+00> : vector<16xf32>
    %146 = vector.multi_reduction <add>, %145, %cst_70 [1] : vector<16x32xf32> to vector<16xf32>
    %147 = vector.shape_cast %146 : vector<16xf32> to vector<16x1xf32>
    %cst_71 = arith.constant 3.200000e+01 : f32
    %148 = vector.broadcast %cst_71 : f32 to vector<16x1xf32>
    %149 = arith.divf %147, %148 : vector<16x1xf32>
    %150 = vector.broadcast %142 : vector<16x1xf32> to vector<16x32xf32>
    %151 = arith.subf %134, %150 : vector<16x32xf32>
    %cst_72 = arith.constant 9.99999996E-13 : f32
    %152 = vector.broadcast %cst_72 : f32 to vector<16x1xf32>
    %153 = arith.addf %149, %152 : vector<16x1xf32>
    %154 = math.rsqrt %153 : vector<16x1xf32>
    %155 = vector.broadcast %154 : vector<16x1xf32> to vector<16x32xf32>
    %156 = arith.mulf %151, %155 : vector<16x32xf32>
    %157 = vector.broadcast %136 : vector<1x32xf32> to vector<16x32xf32>
    %158 = arith.mulf %156, %157 : vector<16x32xf32>
    %159 = vector.broadcast %138 : vector<1x32xf32> to vector<16x32xf32>
    %160 = arith.addf %158, %159 : vector<16x32xf32>
    %c0_73 = arith.constant 0 : index
    %c0_74 = arith.constant 0 : index
    %161 = vector.load %arg20[%c0_73, %c0_74] : memref<16x32xf32, #tpu.memory_space<vmem>>, vector<16x32xf32>
    tpu.vector_store %arg20[%c0_73, %c0_74], %160 {strides = array<i32>} : memref<16x32xf32, #tpu.memory_space<vmem>>, vector<16x32xf32>,
    %c1_i32 = arith.constant 1 : i32
    %162 = arith.cmpi eq, %arg0, %c1_i32 : i32
    %163 = arith.extui %162 : i1 to i32
    %c0_i32_75 = arith.constant 0 : i32
    %164 = arith.cmpi ne, %163, %c0_i32_75 : i32
    scf.if %164 {
      %165 = vector.shape_cast %160 : vector<16x32xf32> to vector<2x8x32xf32>
      %166 = vector.extract_strided_slice %165 {offsets = [0, 0, 0], sizes = [2, 1, 32], strides = [1, 1, 1]} : vector<2x8x32xf32> to vector<2x1x32xf32>
      %167 = vector.shape_cast %166 : vector<2x1x32xf32> to vector<2x32xf32>
      %168 = arith.truncf %167 : vector<2x32xf32> to vector<2x32xbf16>
      %c0_76 = arith.constant 0 : index
      %c0_77 = arith.constant 0 : index
      %169 = vector.load %arg17[%c0_76, %c0_77] : memref<32x128xbf16, #tpu.memory_space<vmem>>, vector<32x128xbf16>
      %cst_78 = arith.constant dense<0.000000e+00> : vector<2x128xf32>
      %170 = tpu.matmul %168, %169, %cst_78 {dimension_numbers = #tpu.dot_dimension_numbers<[1], [0], [0], [1], [0, 0, 1, 1], [], []>} : vector<2x32xbf16>, vector<32x128xbf16>, vector<2x128xf32> -> vector<2x128xf32>
      %c0_79 = arith.constant 0 : index
      %c0_80 = arith.constant 0 : index
      %171 = vector.load %arg18[%c0_79, %c0_80] : memref<1x128xf32, #tpu.memory_space<vmem>>, vector<1x128xf32>
      %172 = vector.broadcast %171 : vector<1x128xf32> to vector<2x128xf32>
      %173 = arith.addf %170, %172 : vector<2x128xf32>
      %c0_81 = arith.constant 0 : index
      %c0_82 = arith.constant 0 : index
      %174 = vector.load %arg19[%c0_81, %c0_82] : memref<2x128xf32, #tpu.memory_space<vmem>>, vector<2x128xf32>
      tpu.vector_store %arg19[%c0_81, %c0_82], %173 {strides = array<i32>} : memref<2x128xf32, #tpu.memory_space<vmem>>, vector<2x128xf32>,
    } else {
    }
    return
  }
  func.func @transform_0(%arg0: i32) -> (i32, i32) {
    %c0_i32 = arith.constant 0 : i32
    %c0_i32_0 = arith.constant 0 : i32
    %c0_i32_1 = arith.constant 0 : i32
    return %c0_i32, %c0_i32_0 : i32, i32
  }
  func.func @transform_1(%arg0: i32) -> (i32, i32) {
    %c0_i32 = arith.constant 0 : i32
    %c0_i32_0 = arith.constant 0 : i32
    %c0_i32_1 = arith.constant 0 : i32
    return %c0_i32, %c0_i32_0 : i32, i32
  }
  func.func @transform_2(%arg0: i32) -> (i32, i32) {
    %c0_i32 = arith.constant 0 : i32
    %c0_i32_0 = arith.constant 0 : i32
    %c0_i32_1 = arith.constant 0 : i32
    return %c0_i32, %c0_i32_0 : i32, i32
  }
  func.func @transform_3(%arg0: i32) -> (i32, i32) {
    %c0_i32 = arith.constant 0 : i32
    %c0_i32_0 = arith.constant 0 : i32
    %c0_i32_1 = arith.constant 0 : i32
    return %c0_i32, %c0_i32_0 : i32, i32
  }
  func.func @transform_4(%arg0: i32) -> (i32, i32, i32) {
    %c0_i32 = arith.constant 0 : i32
    %c0_i32_0 = arith.constant 0 : i32
    %c0_i32_1 = arith.constant 0 : i32
    return %arg0, %c0_i32, %c0_i32_0 : i32, i32, i32
  }
  func.func @transform_5(%arg0: i32) -> (i32, i32, i32) {
    %c0_i32 = arith.constant 0 : i32
    %c0_i32_0 = arith.constant 0 : i32
    %c0_i32_1 = arith.constant 0 : i32
    return %arg0, %c0_i32, %c0_i32_0 : i32, i32, i32
  }
  func.func @transform_6(%arg0: i32) -> (i32, i32, i32) {
    %c0_i32 = arith.constant 0 : i32
    %c0_i32_0 = arith.constant 0 : i32
    %c0_i32_1 = arith.constant 0 : i32
    return %arg0, %c0_i32, %c0_i32_0 : i32, i32, i32
  }
  func.func @transform_7(%arg0: i32) -> (i32, i32, i32) {
    %c0_i32 = arith.constant 0 : i32
    %c0_i32_0 = arith.constant 0 : i32
    %c0_i32_1 = arith.constant 0 : i32
    return %arg0, %c0_i32, %c0_i32_0 : i32, i32, i32
  }
  func.func @transform_8(%arg0: i32) -> (i32, i32, i32) {
    %c0_i32 = arith.constant 0 : i32
    %c0_i32_0 = arith.constant 0 : i32
    %c0_i32_1 = arith.constant 0 : i32
    return %arg0, %c0_i32, %c0_i32_0 : i32, i32, i32
  }
  func.func @transform_9(%arg0: i32) -> (i32, i32, i32) {
    %c0_i32 = arith.constant 0 : i32
    %c0_i32_0 = arith.constant 0 : i32
    %c0_i32_1 = arith.constant 0 : i32
    return %arg0, %c0_i32, %c0_i32_0 : i32, i32, i32
  }
  func.func @transform_10(%arg0: i32) -> (i32, i32, i32) {
    %c0_i32 = arith.constant 0 : i32
    %c0_i32_0 = arith.constant 0 : i32
    %c0_i32_1 = arith.constant 0 : i32
    return %arg0, %c0_i32, %c0_i32_0 : i32, i32, i32
  }
  func.func @transform_11(%arg0: i32) -> (i32, i32, i32) {
    %c0_i32 = arith.constant 0 : i32
    %c0_i32_0 = arith.constant 0 : i32
    %c0_i32_1 = arith.constant 0 : i32
    return %arg0, %c0_i32, %c0_i32_0 : i32, i32, i32
  }
  func.func @transform_12(%arg0: i32) -> (i32, i32, i32) {
    %c0_i32 = arith.constant 0 : i32
    %c0_i32_0 = arith.constant 0 : i32
    %c0_i32_1 = arith.constant 0 : i32
    return %arg0, %c0_i32, %c0_i32_0 : i32, i32, i32
  }
  func.func @transform_13(%arg0: i32) -> (i32, i32, i32) {
    %c0_i32 = arith.constant 0 : i32
    %c0_i32_0 = arith.constant 0 : i32
    %c0_i32_1 = arith.constant 0 : i32
    return %arg0, %c0_i32, %c0_i32_0 : i32, i32, i32
  }
  func.func @transform_14(%arg0: i32) -> (i32, i32, i32) {
    %c0_i32 = arith.constant 0 : i32
    %c0_i32_0 = arith.constant 0 : i32
    %c0_i32_1 = arith.constant 0 : i32
    return %arg0, %c0_i32, %c0_i32_0 : i32, i32, i32
  }
  func.func @transform_15(%arg0: i32) -> (i32, i32, i32) {
    %c0_i32 = arith.constant 0 : i32
    %c0_i32_0 = arith.constant 0 : i32
    %c0_i32_1 = arith.constant 0 : i32
    return %arg0, %c0_i32, %c0_i32_0 : i32, i32, i32
  }
  func.func @transform_16(%arg0: i32) -> (i32, i32) {
    %c0_i32 = arith.constant 0 : i32
    %c0_i32_0 = arith.constant 0 : i32
    %c0_i32_1 = arith.constant 0 : i32
    return %c0_i32, %c0_i32_0 : i32, i32
  }
  func.func @transform_17(%arg0: i32) -> (i32, i32) {
    %c0_i32 = arith.constant 0 : i32
    %c0_i32_0 = arith.constant 0 : i32
    %c0_i32_1 = arith.constant 0 : i32
    return %c0_i32, %c0_i32_0 : i32, i32
  }
  func.func @transform_18(%arg0: i32) -> (i32, i32) {
    %c0_i32 = arith.constant 0 : i32
    %c0_i32_0 = arith.constant 0 : i32
    %c0_i32_1 = arith.constant 0 : i32
    return %c0_i32, %c0_i32_0 : i32, i32
  }
}

</mosaic_0001>

<bundles_post_ra>
// kernel: sentiment_classifier_forward.1
= control target key start
LH: loop header
LB: loop body
LE: loop exit
PB: predicated region body
PF: predicated region fallthrough
CT: control target
= control target key end

     0   :  { %s2611_s0 = inlined_call_operand.vmem [shape: f32[16,32], index: 0, kind: input, shape index: {}]   ;;  %s2612_s1 = inlined_call_operand.vmem [shape: f32[2,8], index: 1, kind: input, shape index: {}]   ;;  %s2613_s2 = inlined_call_operand.vmem [shape: f32[1,32], index: 2, kind: input, shape index: {}]   ;;  %s2614_s3 = inlined_call_operand.vmem [shape: f32[1,32], index: 3, kind: input, shape index: {}]   ;;  %s2615_s4 = inlined_call_operand.vmem [shape: bf16[2,32,96], index: 4, kind: input, shape index: {}]   ;;  %s2616_s5 = inlined_call_operand.vmem [shape: f32[2,1,96], index: 5, kind: input, shape index: {}]   ;;  %s2617_s6 = inlined_call_operand.vmem [shape: bf16[2,32,32], index: 6, kind: input, shape index: {}]   ;;  %s2618_s7 = inlined_call_operand.vmem [shape: f32[2,1,32], index: 7, kind: input, shape index: {}]   ;;  %s2619_s8 = inlined_call_operand.vmem [shape: f32[2,1,32], index: 8, kind: input, shape index: {}]   ;;  %s2620_s9 = inlined_call_operand.vmem [shape: f32[2,1,32], index: 9, kind: input, shape index: {}]   ;;  %s2621_s10 = inlined_call_operand.vmem [shape: bf16[2,32,64], index: 10, kind: input, shape index: {}]   ;;  %s2622_s11 = inlined_call_operand.vmem [shape: f32[2,1,64], index: 11, kind: input, shape index: {}]   ;;  %s2623_s12 = inlined_call_operand.vmem [shape: bf16[2,64,32], index: 12, kind: input, shape index: {}]   ;;  %s2624_s13 = inlined_call_operand.vmem [shape: f32[2,1,32], index: 13, kind: input, shape index: {}]   ;;  %s2625_s14 = inlined_call_operand.vmem [shape: f32[2,1,32], index: 14, kind: input, shape index: {}]   ;;  %s2626_s15 = inlined_call_operand.vmem [shape: f32[2,1,32], index: 15, kind: input, shape index: {}]   ;;  %s2627_s16 = inlined_call_operand.vmem [shape: bf16[32,128], index: 16, kind: input, shape index: {}]   ;;  %s2628_s17 = inlined_call_operand.vmem [shape: f32[1,128], index: 17, kind: input, shape index: {}]   ;;  %s2629_s18 = inlined_call_operand.hbm [shape: f32[2,128], index: 18, kind: output, shape index: {}]  }
   0x1   :  { %2635 = sst [smem:[#allocation9_spill]] %s2611_s0 }
   0x2   :  { %2636 = sst [smem:[#allocation10_spill]] %s2612_s1 }
   0x3   :  { %2637 = sst [smem:[#allocation11_spill]] %s2613_s2 }
   0x4   :  { %2638 = sst [smem:[#allocation12_spill]] %s2615_s4 }
   0x5   :  { %2639 = sst [smem:[#allocation13_spill]] %s2617_s6 }
   0x6   :  { %2640 = sst [smem:[#allocation14_spill]] %s2627_s16 }
   0x7   :  { %2641 = sst [smem:[#allocation15_spill]] %s2628_s17 }
   0x8   :  { %2642 = sst [smem:[#allocation16_spill]] %s2629_s18 }
   0x9   :  { %23 = vsyncpa [#allocation5], 0  ;;  %s2321_s27 = smov 0  }
   0xa LB: > { %2643 = sst [smem:[#allocation7_spill]] %s2212_s27  ;;  %s2327_s28 = sadd.s32 4294967295, %s2212_s27   ;;  %s2212_s27 = sphi %s2321_s27, %s29_s27  }
   0xb   : > { %p1926_p0 = scmp.ge.s32.totalorder %s2212_s27, 1  ;;  %p602_p1 = scmp.lt.s32.totalorder %s2212_s27, 3 }
   0xd   : > { %p603_p2 = pnand %p1926_p0, %p602_p1 }
   0xf   : > { %606 = sbr.rel (%p603_p2) target bundleno = 3667 (0xe53), region = 92 }
  0x16   : > { %p690_p3 = scmp.lt.s32.totalorder %s2327_s28, 1  ;;  %s2644_s4 = sld [smem:[#allocation12_spill]] }
  0x17   : > { %s2645_s6 = sld [smem:[#allocation13_spill]]  ;;  %p1935_p4 = scmp.ne.s32.totalorder %s2327_s28, 0 }
  0x18   : > { %s2333_s29 = scalar_select %p690_p3, %s2327_s28, 1 }
  0x19   : > { %738 = sbr.rel (%p1935_p4) target bundleno = 350 (0x15e), region = 96  ;;  %s2647_s25 = sld [smem:[#allocation9_spill]] (!%p1935_p4)  ;;  %vm743_vm0 = vcmask (!%p1935_p4), 261120   ;;  %v1937_v23 = vld [vmem:[%s2614_s3] ss:$0 sm:$0xff] (!%p1935_p4) }
  0x1a   : > { %s1977_s30 = sshll.u32 %s2333_s29, 4  ;;  %s727_s0 = scalar_lea.vmem %s2624_s13, %s2333_s29 }
  0x1b   : > { %s730_s20 = scalar_lea.vmem %s2625_s14, %s2333_s29  ;;  %s733_s16 = scalar_lea.vmem %s2626_s15, %s2333_s29 }
  0x1c   : > { %s2343_s22 = scalar_lea.vmem %s2644_s4, %s1977_s30  ;;  %s2365_s4 = scalar_lea.vmem %s2621_s10, %s1977_s30 }
  0x1d   : > { %s2348_s24 = scalar_lea.vmem %s2645_s6, %s1977_s30  ;;  %s719_s6 = scalar_lea.vmem %s2622_s11, %s2333_s29 }
  0x1e   : > { %2646 = sst [smem:[#allocation8_spill]] %s2348_s24  ;;  %s1980_s24 = sshll.u32 %s2333_s29, 5 }
  0x1f   : > { %s2375_s27 = scalar_lea.vmem %s2623_s12, %s1980_s24  ;;  %v739_v0 = vld [vmem:[%s2647_s25] sm:$0xff] (!%p1935_p4)  ;;  %v740_v1 = vld [vmem:[%s2647_s25 + $0x8] sm:$0xff] (!%p1935_p4)  ;;  %s2648_s18 = sld [smem:[#allocation11_spill]] (!%p1935_p4) }
  0x20   : > { %v744_v2 = vsel %vm743_vm0, %v739_v0, 0.0  ;;  %v747_v3 = vsel %vm743_vm0, %v740_v1, 0.0 }
  0x21   : > { %745 = vadd.xlane.f32.xlu0 %v744_v2 }
  0x25   : > { %748 = vadd.xlane.f32.xlu0 %v747_v3  ;;  %v1936_v21 = vld [vmem:[%s2648_s18] ss:$0 sm:$0xff] }
  0xae   : > { %v746_v4 = vpop.xlane.xlu0 %745 }
  0xaf   : > { %v751_v5 = vmul.f32 0.03125, %v746_v4 }
  0xb1   : > { %v753_v6 = vsub.f32 %v739_v0, %v751_v5 }
  0xb2   : > { %v749_v7 = vpop.xlane.xlu0 %748 }
  0xb3   : > { %v752_v8 = vmul.f32 0.03125, %v749_v7  ;;  %v755_v9 = vmul.f32 %v753_v6, %v753_v6 }
  0xb5   : > { %v754_v10 = vsub.f32 %v740_v1, %v752_v8  ;;  %v757_v11 = vsel %vm743_vm0, %v755_v9, 0.0 }
  0xb6   : > { %758 = vadd.xlane.f32.xlu1 %v757_v11 }
  0xb7   : > { %v756_v12 = vmul.f32 %v754_v10, %v754_v10 }
  0xb9   : > { %v760_v13 = vsel %vm743_vm0, %v756_v12, 0.0 }
  0xba   : > { %761 = vadd.xlane.f32.xlu1 %v760_v13 }
 0x143   : > { %v759_v14 = vpop.xlane.xlu1 %758 }
 0x144   : > { %v763_v15 = vmul.f32 0.03125, %v759_v14 }
 0x146   : > { %v765_v16 = vadd.f32 1e-12, %v763_v15 }
 0x147   : > { %v762_v17 = vpop.xlane.xlu1 %761 }
 0x148   : > { %2132 = vrsqrt.f32 %v765_v16  ;;  %v764_v18 = vmul.f32 0.03125, %v762_v17 }
 0x14a   : > { %v766_v19 = vadd.f32 1e-12, %v764_v18 }
 0x14c   : > { %2134 = vrsqrt.f32 %v766_v19 }
 0x152   : > { %v2133_v20 = vpop.eup %2132 }
 0x153   : > { %v769_v22 = vmul.f32 %v2133_v20, %v753_v6 }
 0x155   : > { %v777_v24 = vmul.f32 %v1936_v21, %v769_v22 }
 0x156   : > { %v2135_v25 = vpop.eup %2134 }
 0x157   : > { %v785_v26 = vadd.f32 %v1937_v23, %v777_v24  ;;  %v770_v27 = vmul.f32 %v2135_v25, %v754_v10 }
 0x159   : > { %787 = vst.msk [vmem:[#allocation2] sm:$0xff] %vm743_vm0, %v785_v26  ;;  %v778_v28 = vmul.f32 %v1936_v21, %v770_v27 }
 0x15b   : > { %v786_v29 = vadd.f32 %v1937_v23, %v778_v28 }
 0x15d   : > { %788 = vst.msk [vmem:[#allocation2 + $0x8] sm:$0xff] %vm743_vm0, %v786_v29 }
 0x15e PF: > { %v2136_v30 = vld [vmem:[%s2343_s22] sm:$0xff]   ;;  %v2214_v31 = vmov 0.0   ;;  %v2137_v32 = vld [vmem:[%s2343_s22 + $0x8] sm:$0xff]   ;;  %vm2215_vm1 = vmmov 0   ;;  %vm841_vm2 = vcmask 261120   ;;  %s2649_s2 = scalar_lea.vmem %s2616_s5, %s2333_s29  ;;  %s2216_s23 = smov 96   ;;  %v798_v51 = vlaneseq }
 0x15f   : > { %2014 = vmatprep.subr.bf16.mxu0 %v2214_v31  ;;  %2022 = vmatprep.subr.bf16.mxu1 %v2214_v31  ;;  %v1938_v36 = vld [vmem:[%s2649_s2] ss:$0 sm:$0xff]  ;;  %vm891_vm3 = vcmask 130048   ;;  %v2217_v49 = vmov 1966171168   ;;  %s2650_s1 = sld [smem:[#allocation10_spill]]  ;;  %s2652_s24 = scalar_lea.vmem %s2618_s7, %s2333_s29 }
 0x160   : > { %2015 = vmatpush3.bf16.msra.mxu0 %v2136_v30  ;;  %2018 = vmatprep.mubr.msk.bf16.mxu0 %vm2215_vm1, %v2214_v31  ;;  %v2414_v33 = vld [vmem:[#allocation2] sm:$0xff]  ;;  %v796_v50 = vunpack.c.l.s4 %v2217_v49  ;;  %v799_v55 = vshrl.u32 %v798_v51, 7  ;;  %vm1001_vm4 = vcmask 64512   ;;  %s2218_s17 = smov 64   ;;  %s2219_s18 = smov 80   ;;  %vm1031_vm5 = vcmask 1043456  }
 0x161   : > { %2016 = vmatprep.subr.bf16.mxu0 %v2214_v31  ;;  %2024 = vmatprep.mubr.msk.bf16.mxu1 %vm2215_vm1, %v2214_v31  ;;  %s2220_s19 = smov 112   ;;  %s2221_s30 = smov 48   ;;  %vm1357_vm6 = vcmask 261248   ;;  %vm1595_vm7 = vcmask 523264  }
 0x162   : > { %v797_v54 = vunpack.c.0.s8 %v796_v50  ;;  %v991_v60 = vsub.s32 0, %v799_v55  ;;  %s2651_s22 = sld [smem:[#allocation8_spill]]  ;;  %s2222_s21 = smov 16  }
 0x163   : > { %p1968_p5 = scmp.ne.s32.totalorder %s2327_s28, 1 }
 0x164   : > { %v2416_v34 = vld [vmem:[#allocation2 + $0x8] sm:$0xff]  ;;  %2017 = vmatpush3.bf16.msra.mxu0 %v2137_v32  ;;  %v800_v57 = vsub.s32 %v797_v54, %v799_v55  ;;  %s2655_s26 = sld [smem:[#allocation14_spill]] (!%p1968_p5)  ;;  %vm2224_vm8 = vmmov (!%p1968_p5), 0   ;;  %vm1710_vm9 = vcmask (!%p1968_p5), 1041409  }
 0x165   : > { %v817_v35 = vpack.c.bf16 %v2416_v34, %v2414_v33  ;;  %2028 = vmatprep.subr.bf16.mxu0 %v2214_v31  ;;  %v791_v52 = vld [vmem:[%s2650_s1] sm:$0x3] }
 0x166   : > { %v792_v53 = vsub.f32 1.0, %v791_v52 }
 0x167   : > { %2019 = vmatmul.mubr.msk.bf16.vlgmr.msra.gmra.mrb[0].mxu0 %vm841_vm2, %v817_v35 }
 0x168   : > { %2030 = vmatprep.mubr.msk.bf16.mxu0 %vm2215_vm1, %v2214_v31  ;;  %v793_v56 = vmul.f32 -1e+09, %v792_v53 }
 0x16a   : > { %v801_v58 = vrot.slane %v793_v56, %v800_v57 }
 0x16c   : > { %v809_v59 = vrot.slane %v801_v58, %v800_v57  ;;  %v802_v61 = vcombine.high %v801_v58, %v801_v58 }
 0x16e   : > { %v2453_v62 = vrot.slane %v809_v59, %v991_v60  ;;  %v816_v63 = vrot.slane %v802_v61, %v800_v57 }
 0x170   : > { %v2456_v6 = vrot.slane %v816_v63, %v991_v60 }
 0x23a   : > { %v879_v37 = vpop.f32.mrb[0].mxu0 }
 0x23b   : > { %v880_v38 = vadd.f32 %v1938_v36, %v879_v37  ;;  %v2020_v39 = vpop.f32.mrb[1].mxu0 }
 0x23c   : > { %v882_v40 = vpop.f32.mrb[2].mxu0 }
 0x23d   : > { %v2432_v41 = vpack.c.bf16 %v880_v38, %v880_v38  ;;  %v883_v42 = vadd.f32 %v1938_v36, %v882_v40  ;;  %v2021_v43 = vpop.f32.mrb[3].mxu0 }
 0x23f   : > { %889 = vrot.lane.b32.xlu0 %v2432_v41, %s2216_s23  ;;  %v2435_v44 = vpack.c.bf16 %v883_v42, %v883_v42 }
 0x243   : > { %939 = vrot.lane.b32.xlu0 %v2435_v44, %s2216_s23 }
 0x2b1   : > { %v890_v45 = vpop.permute.xlu0 %889 }
 0x2b2   : > { %v896_v46 = vsel %vm891_vm3, %v890_v45, 0 }
 0x2b3   : > { %2023 = vmatpush3.bf16.xpose.msra.mxu1 %v896_v46 }
 0x2b4   : > { %2034 = vmatprep.subr.bf16.mxu1 %v2214_v31 }
 0x2b5   : > { %v940_v47 = vpop.permute.xlu0 %939 }
 0x2b6   : > { %v945_v48 = vsel %vm891_vm3, %v940_v47, 0 }
 0x2b7   : > { %2029 = vmatpush3.bf16.xpose.msra.mxu0 %v945_v48 }
 0x2b8   : > { %2040 = vmatprep.subr.bf16.mxu0 %v2214_v31 }
 0x2ba   : > { %2025 = vmatmul.mubr.msk.bf16.vlgmr.msra.gmra.mrb[0].mxu1 %vm891_vm3, %v2432_v41 }
 0x2bb   : > { %2036 = vmatprep.mubr.msk.bf16.mxu1 %vm2215_vm1, %v2214_v31 }
 0x2be   : > { %2031 = vmatmul.mubr.msk.bf16.vlgmr.msra.gmra.mrb[4].mxu0 %vm891_vm3, %v2435_v44 }
 0x2bf   : > { %2042 = vmatprep.mubr.msk.bf16.mxu0 %vm2215_vm1, %v2214_v31 }
 0x38d   : > { %v932_v0 = vpop.f32.mrb[0].mxu1 }
 0x38e   : > { %v987_v1 = vmul.f32 0.25, %v932_v0  ;;  %v2026_v2 = vpop.f32.mrb[1].mxu1 }
 0x38f   : > { %v935_v3 = vpop.f32.mrb[2].mxu1 }
 0x390   : > { %v2027_v4 = vpop.f32.mrb[3].mxu1  ;;  %v999_v5 = vadd.f32 %v2453_v62, %v987_v1 }
 0x391   : > { %v981_v7 = vpop.f32.mrb[4].mxu0 }
 0x392   : > { %v988_v8 = vmul.f32 0.25, %v981_v7  ;;  %v2032_v9 = vpop.f32.mrb[5].mxu0  ;;  %v1002_v10 = vsel %vm1001_vm4, %v999_v5, -inf }
 0x393   : > { %1003 = vmax.xlane.f32.xlu1 %v1002_v10  ;;  %v984_v11 = vpop.f32.mrb[6].mxu0 }
 0x394   : > { %v2033_v12 = vpop.f32.mrb[7].mxu0  ;;  %v1000_v13 = vadd.f32 %v2456_v6, %v988_v8 }
 0x396   : > { %v1005_v14 = vsel %vm1001_vm4, %v1000_v13, -inf }
 0x397   : > { %1006 = vmax.xlane.f32.xlu1 %v1005_v14 }
 0x3a8   : > { %1026 = vrot.lane.b32.xlu1 %v2432_v41, %s2218_s17 }
 0x3ac   : > { %1075 = vrot.lane.b32.xlu1 %v2435_v44, %s2218_s17  ;;  %s2656_s17 = sld [smem:[#allocation15_spill]] (!%p1968_p5) }
 0x3b0   : > { %1127 = vrot.lane.b32.xlu1 %v2432_v41, %s2219_s18 }
 0x420   : > { %v1004_v15 = vpop.xlane.xlu1 %1003 }
 0x421   : > { %v1008_v16 = vsub.f32 %v999_v5, %v1004_v15 }
 0x423   : > { %v1010_v17 = vmul.f32 1.442695, %v1008_v16 }
 0x424   : > { %v1007_v18 = vpop.xlane.xlu1 %1006 }
 0x425   : > { %2146 = vpow2.f32 %v1010_v17  ;;  %v1009_v19 = vsub.f32 %v1000_v13, %v1007_v18 }
 0x427   : > { %v1012_v20 = vmul.f32 1.442695, %v1009_v19 }
 0x428   : > { %v1027_v21 = vpop.permute.xlu1 %1026 }
 0x429   : > { %2148 = vpow2.f32 %v1012_v20  ;;  %v1033_v22 = vsel %vm1031_vm5, %v1027_v21, 0 }
 0x42a   : > { %2035 = vmatpush3.bf16.msra.mxu1 %v1033_v22 }
 0x42b   : > { %2046 = vmatprep.subr.bf16.mxu1 %v2214_v31 }
 0x42c   : > { %v1076_v23 = vpop.permute.xlu1 %1075 }
 0x42d   : > { %v1081_v24 = vsel %vm1031_vm5, %v1076_v23, 0 }
 0x42e   : > { %2041 = vmatpush3.bf16.msra.mxu0 %v1081_v24 }
 0x42f   : > { %v2147_v25 = vpop.eup %2146  ;;  %2052 = vmatprep.subr.bf16.mxu0 %v2214_v31 }
 0x430   : > { %v1014_v26 = vsel %vm1001_vm4, %v2147_v25, 0.0  ;;  %v1128_v29 = vpop.permute.xlu1 %1127 }
 0x431   : > { %1015 = vadd.xlane.f32.xlu0 %v1014_v26  ;;  %v1133_v39 = vsel %vm891_vm3, %v1128_v29, 0  ;;  %v2138_v26 = vld [vmem:[%s2651_s22] sm:$0xff]  }
 0x433   : > { %v2149_v27 = vpop.eup %2148 }
 0x434   : > { %v1017_v28 = vsel %vm1001_vm4, %v2149_v27, 0.0 }
 0x435   : > { %1018 = vadd.xlane.f32.xlu1 %v1017_v28 }
 0x446   : > { %1177 = vrot.lane.b32.xlu1 %v2435_v44, %s2219_s18 }
 0x447   : > { %1125 = vrot.lane.b32.xlu0 %v2432_v41, %s2220_s19 }
 0x44a   : > { %1175 = vrot.lane.b32.xlu1 %v2435_v44, %s2220_s19  ;;  %s2654_s19 = scalar_lea.vmem %s2620_s9, %s2333_s29 }
 0x4be   : > { %v1016_v30 = vpop.xlane.xlu0 %1015 }
 0x4bf   : > { %2150 = vrcp.f32 %v1016_v30 }
 0x4c2   : > { %v1019_v32 = vpop.xlane.xlu1 %1018  ;;  %v1126_v46 = vpop.permute.xlu0 %1125 }
 0x4c3   : > { %2152 = vrcp.f32 %v1019_v32 }
 0x4c6   : > { %v1178_v42 = vpop.permute.xlu1 %1177 }
 0x4c7   : > { %v1183_v45 = vsel %vm891_vm3, %v1178_v42, 0 }
 0x4c9   : > { %v2151_v35 = vpop.eup %2150 }
 0x4ca   : > { %v1022_v36 = vmul.f32 %v2151_v35, %v2147_v25  ;;  %v1176_v47 = vpop.permute.xlu1 %1175 }
 0x4cc   : > { %v1024_v37 = vpack.c.bf16 %v1022_v36, %v1022_v36 }
 0x4cd   : > { %v2153_v38 = vpop.eup %2152 }
 0x4ce   : > { %v1023_v40 = vmul.f32 %v2153_v38, %v2149_v27  ;;  %2037 = vmatmul.mubr.msk.bf16.vlgmr.msra.gmra.mrb[4].mxu1 %vm1001_vm4, %v1024_v37  ;;  %v2139_v27 = vld [vmem:[%s2651_s22 + $0x8] sm:$0xff]  }
 0x4cf   : > { %2047 = vmatpush3.bf16.xpose.msra.mxu1 %v1133_v39  ;;  %2048 = vmatprep.mubr.msk.bf16.mxu1 %vm2215_vm1, %v2214_v31 }
 0x4d0   : > { %v1025_v43 = vpack.c.bf16 %v1023_v40, %v1023_v40  ;;  %2058 = vmatprep.subr.bf16.mxu1 %v2214_v31 }
 0x4d2   : > { %2043 = vmatmul.mubr.msk.bf16.vlgmr.msra.gmra.mrb[8].mxu0 %vm1001_vm4, %v1025_v43 }
 0x4d3   : > { %2053 = vmatpush3.bf16.xpose.msra.mxu0 %v1183_v45  ;;  %2054 = vmatprep.mubr.msk.bf16.mxu0 %vm2215_vm1, %v2214_v31 }
 0x4d4   : > { %2064 = vmatprep.subr.bf16.mxu0 %v2214_v31 }
 0x4d6   : > { %2049 = vmatmul.mubr.msk.bf16.vlgmr.msra.gmra.mrb[8].mxu1 %vm891_vm3, %v1126_v46  ;;  %v1950_v46 = vld [vmem:[%s2652_s24] ss:$0 sm:$0xff] }
 0x4d7   : > { %2060 = vmatprep.mubr.msk.bf16.mxu1 %vm2215_vm1, %v2214_v31 }
 0x4da   : > { %2055 = vmatmul.mubr.msk.bf16.vlgmr.msra.gmra.mrb[12].mxu0 %vm891_vm3, %v1176_v47 }
 0x4db   : > { %2066 = vmatprep.mubr.msk.bf16.mxu0 %vm2215_vm1, %v2214_v31 }
 0x5a1   : > { %v1069_v48 = vpop.f32.mrb[4].mxu1 }
 0x5a2   : > { %1123 = vst.msk [vmem:[#allocation3] sm:$0xff] %vm891_vm3, %v1069_v48  ;;  %v2038_v49 = vpop.f32.mrb[5].mxu1 }
 0x5a3   : > { %v1072_v50 = vpop.f32.mrb[6].mxu1 }
 0x5a4   : > { %v2039_v51 = vpop.f32.mrb[7].mxu1 }
 0x5a5   : > { %v1117_v52 = vpop.f32.mrb[8].mxu0 }
 0x5a6   : > { %1124 = vst.msk [vmem:[#allocation3 + $0x8] sm:$0xff] %vm891_vm3, %v1117_v52  ;;  %v2044_v53 = vpop.f32.mrb[9].mxu0 }
 0x5a7   : > { %v1120_v54 = vpop.f32.mrb[10].mxu0 }
 0x5a8   : > { %v2045_v55 = vpop.f32.mrb[11].mxu0 }
 0x5a9   : > { %v1169_v56 = vpop.f32.mrb[8].mxu1 }
 0x5aa   : > { %v1225_v57 = vmul.f32 0.25, %v1169_v56  ;;  %v2050_v58 = vpop.f32.mrb[9].mxu1 }
 0x5ab   : > { %v1172_v59 = vpop.f32.mrb[10].mxu1 }
 0x5ac   : > { %v2051_v60 = vpop.f32.mrb[11].mxu1  ;;  %v1227_v61 = vadd.f32 %v1225_v57, %v2453_v62 }
 0x5ad   : > { %v1219_v63 = vpop.f32.mrb[12].mxu0 }
 0x5ae   : > { %v1226_v0 = vmul.f32 0.25, %v1219_v63  ;;  %v2056_v1 = vpop.f32.mrb[13].mxu0  ;;  %v1229_v2 = vsel %vm1001_vm4, %v1227_v61, -inf }
 0x5af   : > { %1230 = vmax.xlane.f32.xlu1 %v1229_v2  ;;  %v1222_v3 = vpop.f32.mrb[14].mxu0 }
 0x5b0   : > { %v2057_v4 = vpop.f32.mrb[15].mxu0  ;;  %v1228_v5 = vadd.f32 %v1226_v0, %v2456_v6  ;;  %v2141_v3 = vld [vmem:[%s2365_s4 + $0x8] sm:$0xff]  }
 0x5b2   : > { %v1232_v7 = vsel %vm1001_vm4, %v1228_v5, -inf }
 0x5b3   : > { %1233 = vmax.xlane.f32.xlu0 %v1232_v7 }
 0x5c9   : > { %1301 = vrot.lane.b32.xlu0 %v2435_v44, %s2221_s30 }
 0x63c   : > { %v1231_v8 = vpop.xlane.xlu1 %1230 }
 0x63d   : > { %v1235_v9 = vsub.f32 %v1227_v61, %v1231_v8 }
 0x63f   : > { %v1237_v10 = vmul.f32 1.442695, %v1235_v9 }
 0x640   : > { %v1234_v62 = vpop.xlane.xlu0 %1233 }
 0x641   : > { %2154 = vpow2.f32 %v1237_v10  ;;  %v1236_v11 = vsub.f32 %v1228_v5, %v1234_v62 }
 0x643   : > { %v1239_v12 = vmul.f32 1.442695, %v1236_v11 }
 0x644   : > { %v1302_v13 = vpop.permute.xlu0 %1301 }
 0x645   : > { %2156 = vpow2.f32 %v1239_v12  ;;  %v1307_v14 = vsel %vm1031_vm5, %v1302_v13, 0 }
 0x646   : > { %2065 = vmatpush3.bf16.msra.mxu0 %v1307_v14 }
 0x647   : > { %2078 = vmatprep.subr.bf16.mxu0 %v2214_v31 }
 0x64b   : > { %v2155_v6 = vpop.eup %2154 }
 0x64c   : > { %v1241_v15 = vsel %vm1001_vm4, %v2155_v6, 0.0 }
 0x64d   : > { %1242 = vadd.xlane.f32.xlu1 %v1241_v15  ;;  %v1955_v15 = vld [vmem:[%s2654_s19] ss:$0 sm:$0xff] }
 0x64f   : > { %v2157_v16 = vpop.eup %2156 }
 0x650   : > { %v1244_v44 = vsel %vm1001_vm4, %v2157_v16, 0.0 }
 0x651   : > { %1245 = vadd.xlane.f32.xlu1 %v1244_v44 }
 0x662   : > { %1253 = vrot.lane.b32.xlu1 %v2432_v41, %s2221_s30 }
 0x6da   : > { %v1243_v17 = vpop.xlane.xlu1 %1242 }
 0x6db   : > { %2158 = vrcp.f32 %v1243_v17 }
 0x6de   : > { %v1246_v18 = vpop.xlane.xlu1 %1245 }
 0x6df   : > { %2160 = vrcp.f32 %v1246_v18 }
 0x6e2   : > { %v1254_v19 = vpop.permute.xlu1 %1253 }
 0x6e3   : > { %v1259_v20 = vsel %vm1031_vm5, %v1254_v19, 0  ;;  %v2142_v19 = vld [vmem:[%s2375_s27] sm:$0xff]  }
 0x6e4   : > { %2059 = vmatpush3.bf16.msra.mxu1 %v1259_v20  ;;  %v2143_v20 = vld [vmem:[%s2375_s27 + $0x8] sm:$0xff]  }
 0x6e5   : > { %v2159_v21 = vpop.eup %2158  ;;  %2070 = vmatprep.subr.bf16.mxu1 %v2214_v31 }
 0x6e6   : > { %v1249_v22 = vmul.f32 %v2159_v21, %v2155_v6  ;;  %v2144_v21 = vld [vmem:[%s2375_s27 + $0x10] sm:$0xff]  }
 0x6e8   : > { %v1251_v23 = vpack.c.bf16 %v1249_v22, %v1249_v22  ;;  %v2145_v22 = vld [vmem:[%s2375_s27 + $0x18] sm:$0xff]  }
 0x6e9   : > { %v2161_v24 = vpop.eup %2160 }
 0x6ea   : > { %v1250_v25 = vmul.f32 %v2161_v24, %v2157_v16  ;;  %2061 = vmatmul.mubr.msk.bf16.vlgmr.msra.gmra.mrb[12].mxu1 %vm1001_vm4, %v1251_v23  ;;  %v1956_v23 = vld [vmem:[%s719_s6] ss:$0 sm:$0xff] }
 0x6eb   : > { %2074 = vmatprep.mubr.msk.bf16.mxu1 %vm2215_vm1, %v2214_v31  ;;  %2071 = vmatpush3.bf16.msra.mxu1 %v2138_v26 }
 0x6ec   : > { %v1252_v41 = vpack.c.bf16 %v1250_v25, %v1250_v25  ;;  %2072 = vmatprep.subr.bf16.mxu1 %v2214_v31 }
 0x6ee   : > { %2067 = vmatmul.mubr.msk.bf16.vlgmr.msra.gmra.mrb[16].mxu0 %vm1001_vm4, %v1252_v41 }
 0x6ef   : > { %2082 = vmatprep.mubr.msk.bf16.mxu0 %vm2215_vm1, %v2214_v31  ;;  %2073 = vmatpush3.bf16.msra.mxu1 %v2139_v27 }
 0x6f0   : > { %2086 = vmatprep.subr.bf16.mxu1 %v2214_v31 }
 0x7bd   : > { %v1295_v28 = vpop.f32.mrb[12].mxu1 }
 0x7be   : > { %1351 = vrot.lane.b32.xlu1 %v1295_v28, %s2222_s21  ;;  %v2062_v29 = vpop.f32.mrb[13].mxu1 }
 0x7bf   : > { %v1298_v30 = vpop.f32.mrb[14].mxu1 }
 0x7c0   : > { %v2063_v32 = vpop.f32.mrb[15].mxu1 }
 0x7c1   : > { %v1343_v35 = vpop.f32.mrb[16].mxu0 }
 0x7c2   : > { %1353 = vrot.lane.b32.xlu1 %v1343_v35, %s2222_s21  ;;  %v2068_v36 = vpop.f32.mrb[17].mxu0 }
 0x7c3   : > { %v1346_v37 = vpop.f32.mrb[18].mxu0 }
 0x7c4   : > { %v2069_v38 = vpop.f32.mrb[19].mxu0 }
 0x830   : > { %v1352_v39 = vpop.permute.xlu1 %1351 }
 0x831   : > { %1358 = vst.msk [vmem:[#allocation3] sm:$0xff] %vm1357_vm6, %v1352_v39 }
 0x834   : > { %v1354_v40 = vpop.permute.xlu1 %1353 }
 0x835   : > { %1359 = vst.msk [vmem:[#allocation3 + $0x8] sm:$0xff] %vm1357_vm6, %v1354_v40 }
 0x838   : > { %v1360_v42 = vld [vmem:[#allocation3] sm:$0xff] }
 0x83c   : > { %v1361_v43 = vld [vmem:[#allocation3 + $0x8] sm:$0xff] }
 0x83d   : > { %v1362_v45 = vpack.c.bf16 %v1361_v43, %v1360_v42  ;;  %v1960_v43 = vld [vmem:[%s727_s0] ss:$0 sm:$0xff] }
 0x83f   : > { %2075 = vmatmul.mubr.msk.bf16.vlgmr.msra.gmra.mrb[16].mxu1 %vm841_vm2, %v1362_v45 }
 0x840   : > { %2094 = vmatprep.mubr.msk.bf16.mxu1 %vm2215_vm1, %v2214_v31  ;;  %2087 = vmatpush3.bf16.msra.mxu1 %v2142_v19 }
 0x841   : > { %2088 = vmatprep.subr.bf16.mxu1 %v2214_v31 }
 0x844   : > { %2089 = vmatpush3.bf16.msra.mxu1 %v2143_v20 }
 0x845   : > { %2090 = vmatprep.subr.bf16.mxu1 %v2214_v31 }
 0x848   : > { %2091 = vmatpush3.bf16.msra.mxu1 %v2144_v21 }
 0x849   : > { %2092 = vmatprep.subr.bf16.mxu1 %v2214_v31 }
 0x84c   : > { %2093 = vmatpush3.bf16.msra.mxu1 %v2145_v22 }
 0x912   : > { %v1423_v47 = vpop.f32.mrb[16].mxu1 }
 0x913   : > { %v1424_v48 = vadd.f32 %v1950_v46, %v1423_v47  ;;  %v2076_v49 = vpop.f32.mrb[17].mxu1 }
 0x914   : > { %v1426_v50 = vpop.f32.mrb[18].mxu1 }
 0x915   : > { %v1427_v51 = vadd.f32 %v1950_v46, %v1426_v50  ;;  %v2077_v52 = vpop.f32.mrb[19].mxu1  ;;  %v1430_v53 = vadd.f32 %v1424_v48, %v2414_v33 }
 0x917   : > { %v1434_v54 = vsel %vm841_vm2, %v1430_v53, 0.0  ;;  %v1431_v55 = vadd.f32 %v1427_v51, %v2416_v34  ;;  %v2140_v34 = vld [vmem:[%s2365_s4] sm:$0xff]   ;;  %s2653_s4 = scalar_lea.vmem %s2619_s8, %s2333_s29 }
 0x918   : > { %1435 = vadd.xlane.f32.xlu0 %v1434_v54  ;;  %2079 = vmatpush3.bf16.msra.mxu0 %v2140_v34  ;;  %v1954_v12 = vld [vmem:[%s2653_s4] ss:$0 sm:$0xff] }
 0x919   : > { %v1437_v56 = vsel %vm841_vm2, %v1431_v55, 0.0  ;;  %2080 = vmatprep.subr.bf16.mxu0 %v2214_v31 }
 0x91a   : > { %1438 = vadd.xlane.f32.xlu1 %v1437_v56 }
 0x91c   : > { %2081 = vmatpush3.bf16.msra.mxu0 %v2141_v3 }
 0x9a5   : > { %v1436_v57 = vpop.xlane.xlu0 %1435 }
 0x9a6   : > { %v1441_v58 = vmul.f32 0.03125, %v1436_v57 }
 0x9a7   : > { %v1439_v59 = vpop.xlane.xlu1 %1438 }
 0x9a8   : > { %v1443_v60 = vsub.f32 %v1430_v53, %v1441_v58  ;;  %v1442_v61 = vmul.f32 0.03125, %v1439_v59 }
 0x9aa   : > { %v1444_v63 = vsub.f32 %v1431_v55, %v1442_v61  ;;  %v1445_v0 = vmul.f32 %v1443_v60, %v1443_v60 }
 0x9ac   : > { %v1447_v1 = vsel %vm841_vm2, %v1445_v0, 0.0  ;;  %v1446_v33 = vmul.f32 %v1444_v63, %v1444_v63 }
 0x9ad   : > { %1448 = vadd.xlane.f32.xlu0 %v1447_v1 }
 0x9ae   : > { %v1450_v2 = vsel %vm841_vm2, %v1446_v33, 0.0 }
 0x9b1   : > { %1451 = vadd.xlane.f32.xlu0 %v1450_v2 }
 0xa3a   : > { %v1449_v4 = vpop.xlane.xlu0 %1448 }
 0xa3b   : > { %v1453_v5 = vmul.f32 0.03125, %v1449_v4 }
 0xa3d   : > { %v1455_v7 = vadd.f32 1e-12, %v1453_v5 }
 0xa3e   : > { %v1452_v8 = vpop.xlane.xlu0 %1451 }
 0xa3f   : > { %2162 = vrsqrt.f32 %v1455_v7  ;;  %v1454_v9 = vmul.f32 0.03125, %v1452_v8  ;;  %v1966_v8 = vld [vmem:[%s730_s20] ss:$0 sm:$0xff] }
 0xa41   : > { %v1456_v10 = vadd.f32 1e-12, %v1454_v9 }
 0xa43   : > { %2164 = vrsqrt.f32 %v1456_v10 }
 0xa49   : > { %v2163_v62 = vpop.eup %2162 }
 0xa4a   : > { %v1459_v11 = vmul.f32 %v2163_v62, %v1443_v60  ;;  %v1967_v62 = vld [vmem:[%s733_s16] ss:$0 sm:$0xff] }
 0xa4c   : > { %v1467_v14 = vmul.f32 %v1954_v12, %v1459_v11 }
 0xa4d   : > { %v2165_v13 = vpop.eup %2164 }
 0xa4e   : > { %v1460_v6 = vmul.f32 %v2165_v13, %v1444_v63  ;;  %v1475_v44 = vadd.f32 %v1955_v15, %v1467_v14 }
 0xa50   : > { %v1468_v16 = vmul.f32 %v1954_v12, %v1460_v6 }
 0xa52   : > { %v1476_v17 = vadd.f32 %v1955_v15, %v1468_v16  ;;  %v2174_v15 = vld [vmem:[%s2655_s26] sm:$0xff] (!%p1968_p5)  }
 0xa54   : > { %v1477_v18 = vpack.c.bf16 %v1476_v17, %v1475_v44 }
 0xa56   : > { %2083 = vmatmul.mubr.msk.bf16.vlgmr.msra.gmra.mrb[20].mxu0 %vm841_vm2, %v1477_v18  ;;  %v2175_v18 = vld [vmem:[%s2655_s26 + $0x8] sm:$0xff] (!%p1968_p5)  }
 0xb29   : > { %v1538_v24 = vpop.f32.mrb[20].mxu0 }
 0xb2a   : > { %v1539_v25 = vadd.f32 %v1956_v23, %v1538_v24  ;;  %v2084_v41 = vpop.f32.mrb[21].mxu0  ;;  %v1969_v24 = vld [vmem:[%s2656_s17] ss:$0 sm:$0xff] (!%p1968_p5) }
 0xb2b   : > { %v1541_v26 = vpop.f32.mrb[22].mxu0 }
 0xb2c   : > { %v1547_v27 = vmul.f32 0.70710677, %v1539_v25  ;;  %v1542_v28 = vadd.f32 %v1956_v23, %v1541_v26  ;;  %v2085_v29 = vpop.f32.mrb[23].mxu0  ;;  %v1545_v36 = vmul.f32 0.5, %v1539_v25 }
 0xb2e   : > { %2166 = verf.f32 %v1547_v27  ;;  %v1548_v30 = vmul.f32 0.70710677, %v1542_v28  ;;  %v1546_v37 = vmul.f32 0.5, %v1542_v28 }
 0xb30   : > { %2168 = verf.f32 %v1548_v30 }
 0xb38   : > { %v2167_v32 = vpop.eup %2166 }
 0xb39   : > { %v1551_v31 = vadd.f32 1.0, %v2167_v32 }
 0xb3a   : > { %v2169_v35 = vpop.eup %2168 }
 0xb3b   : > { %v1552_v38 = vadd.f32 1.0, %v2169_v35  ;;  %v1553_v39 = vmul.f32 %v1551_v31, %v1545_v36 }
 0xb3d   : > { %v1554_v40 = vmul.f32 %v1552_v38, %v1546_v37 }
 0xb3f   : > { %v1555_v42 = vpack.c.bf16 %v1554_v40, %v1553_v39 }
 0xb41   : > { %2095 = vmatmul.mubr.msk.bf16.vlgmr.msra.gmra.mrb[20].mxu1 %vm1595_vm7, %v1555_v42 }
 0xc14   : > { %v1633_v45 = vpop.f32.mrb[20].mxu1 }
 0xc15   : > { %v1634_v46 = vadd.f32 %v1960_v43, %v1633_v45  ;;  %v2096_v47 = vpop.f32.mrb[21].mxu1 }
 0xc16   : > { %v1636_v48 = vpop.f32.mrb[22].mxu1 }
 0xc17   : > { %v1637_v49 = vadd.f32 %v1960_v43, %v1636_v48  ;;  %v2097_v50 = vpop.f32.mrb[23].mxu1  ;;  %v1640_v51 = vadd.f32 %v1634_v46, %v1475_v44 }
 0xc19   : > { %v1644_v52 = vsel %vm841_vm2, %v1640_v51, 0.0  ;;  %v1641_v53 = vadd.f32 %v1637_v49, %v1476_v17  ;;  %v2223_v17 = vmov (!%p1968_p5), 0.0  }
 0xc1a   : > { %1645 = vadd.xlane.f32.xlu1 %v1644_v52  ;;  %2098 = vmatprep.subr.bf16.mxu0 (!%p1968_p5), %v2223_v17 }
 0xc1b   : > { %v1647_v54 = vsel %vm841_vm2, %v1641_v53, 0.0  ;;  %2099 = vmatpush3.bf16.msra.mxu0 (!%p1968_p5), %v2174_v15  ;;  %2102 = vmatprep.mubr.msk.bf16.mxu0 (!%p1968_p5), %vm2224_vm8, %v2223_v17 }
 0xc1c   : > { %1648 = vadd.xlane.f32.xlu0 %v1647_v54  ;;  %2100 = vmatprep.subr.bf16.mxu0 (!%p1968_p5), %v2223_v17 }
 0xc1f   : > { %2101 = vmatpush3.bf16.msra.mxu0 (!%p1968_p5), %v2175_v18 }
 0xca7   : > { %v1646_v55 = vpop.xlane.xlu1 %1645 }
 0xca8   : > { %v1650_v56 = vmul.f32 0.03125, %v1646_v55 }
 0xca9   : > { %v1649_v57 = vpop.xlane.xlu0 %1648 }
 0xcaa   : > { %v1652_v58 = vsub.f32 %v1640_v51, %v1650_v56  ;;  %v1651_v59 = vmul.f32 0.03125, %v1649_v57 }
 0xcac   : > { %v1653_v60 = vsub.f32 %v1641_v53, %v1651_v59  ;;  %v1654_v61 = vmul.f32 %v1652_v58, %v1652_v58 }
 0xcae   : > { %v1656_v63 = vsel %vm841_vm2, %v1654_v61, 0.0  ;;  %v1655_v0 = vmul.f32 %v1653_v60, %v1653_v60 }
 0xcaf   : > { %1657 = vadd.xlane.f32.xlu1 %v1656_v63 }
 0xcb0   : > { %v1659_v1 = vsel %vm841_vm2, %v1655_v0, 0.0 }
 0xcb1   : > { %1660 = vadd.xlane.f32.xlu0 %v1659_v1 }
 0xd3c   : > { %v1658_v33 = vpop.xlane.xlu1 %1657 }
 0xd3d   : > { %v1662_v2 = vmul.f32 0.03125, %v1658_v33 }
 0xd3e   : > { %v1661_v34 = vpop.xlane.xlu0 %1660 }
 0xd3f   : > { %v1664_v3 = vadd.f32 1e-12, %v1662_v2  ;;  %v1663_v4 = vmul.f32 0.03125, %v1661_v34 }
 0xd41   : > { %2170 = vrsqrt.f32 %v1664_v3  ;;  %v1665_v5 = vadd.f32 1e-12, %v1663_v4 }
 0xd43   : > { %2172 = vrsqrt.f32 %v1665_v5 }
 0xd4b   : > { %v2171_v7 = vpop.eup %2170 }
 0xd4c   : > { %v1668_v9 = vmul.f32 %v2171_v7, %v1652_v58 }
 0xd4d   : > { %v2173_v10 = vpop.eup %2172 }
 0xd4e   : > { %v1676_v11 = vmul.f32 %v1966_v8, %v1668_v9  ;;  %v1669_v12 = vmul.f32 %v2173_v10, %v1653_v60  ;;  %1691 = sbr.rel (%p1968_p5) target bundleno = 3636 (0xe34), region = 100 }
 0xd50   : > { %v1684_v13 = vadd.f32 %v1967_v62, %v1676_v11  ;;  %v1677_v14 = vmul.f32 %v1966_v8, %v1669_v12 }
 0xd52   : > { %1686 = vst.msk [vmem:[#allocation2] sm:$0xff] %vm841_vm2, %v1684_v13  ;;  %v1685_v6 = vadd.f32 %v1967_v62, %v1677_v14  ;;  %v1692_v16 = vpack.c.bf16 (!%p1968_p5), %v1684_v13, %v1684_v13 }
 0xd54   : > { %1687 = vst.msk [vmem:[#allocation2 + $0x8] sm:$0xff] %vm841_vm2, %v1685_v6  ;;  %v1693_v44 = vpack.c.bf16 (!%p1968_p5), %v1685_v6, %v1685_v6  ;;  %v1707_v19 = vunpack.c.l.b16 (!%p1968_p5), %v1692_v16 }
 0xd56   : > { %v1708_v20 = vunpack.c.l.b16 %v1693_v44 }
 0xd58   : > { %v1709_v21 = vrot.slane %v1708_v20, 7 }
 0xd5a   : > { %v1711_v22 = vsel %vm1710_vm9, %v1709_v21, %v1707_v19 }
 0xd5b   : > { %v1712_v23 = vpack.c.b16 %v1711_v22, %v1711_v22 }
 0xd5d   : > { %2103 = vmatmul.mubr.msk.bf16.vlgmr.msra.gmra.mrb[0].mxu0 %vm841_vm2, %v1712_v23 }
 0xe30   : > { %v1762_v25 = vpop.f32.mrb[0].mxu0 }
 0xe31   : > { %v1763_v41 = vadd.f32 %v1969_v24, %v1762_v25  ;;  %v2104_v26 = vpop.f32.mrb[1].mxu0 }
 0xe32   : > { %v1765_v27 = vpop.f32.mrb[2].mxu0 }
 0xe33   : > { %1768 = vst [vmem:[#allocation4] sm:$0x3] %v1763_v41  ;;  %v2105_v28 = vpop.f32.mrb[3].mxu0 }
 0xe34 PF: > { %p2110_p6 = scmp.eq.s32.totalorder %s2327_s28, 1  ;;  %s2225_s18 = smov [#allocation4]  }
 0xe35   : > { %s1776_s19 = sshll.u32 %s2225_s18, 4  ;;  %s1777_s19 = int_to_ptr.vmem [resolvable:$true] %s1776_s19 }
 0xe36   : > { %s2176_s30 = scalar_lea.vmem %s1777_s19, 32  ;;  %p2183_p10 = scmp.lt.s32.totalorder %s1777_s19, %s1777_s19 }
 0xe37   : > { %p2177_p7 = scmp.ne.s32.totalorder %s1777_s19, %s2176_s30  ;;  %p2184_p11 = scmp.lt.s32.totalorder %s2176_s30, %s2176_s30 }
 0xe39   : > { %p2178_p8 = pnand %p2177_p7, %p2110_p6  ;;  %p2185_p12 = por %p2184_p11, %p2183_p10 }
 0xe3b   : > { %p2179_p9 = pneg %p2178_p8 }
 0xe3d   : > { %p2186_p13 = pnand %p2185_p12, %p2179_p9 }
 0xe3f   : > { %2189 = shalt.err (!%p2186_p13)
}
 0xe40   : > { %s2657_s27 = sld [smem:[#allocation16_spill]] }
 0xe46   : > { %s2658_s0 = smov %s2657_s27  ;;  %s2190_s21 = scalar_lea.hbm %s2657_s27, 32 }
 0xe47   : > { %p2191_p0 = scmp.ne.s32.totalorder %s2658_s0, %s2190_s21  ;;  %p2196_p3 = scmp.lt.u32.totalorder %s2190_s21, %s2658_s0 }
 0xe49   : > { %p2192_p1 = pnand %p2191_p0, %p2110_p6 }
 0xe4b   : > { %p2193_p2 = pneg %p2192_p1 }
 0xe4d   : > { %p2198_p4 = pnand %p2196_p3, %p2193_p2 }
 0xe4f   : > { %2201 = shalt.err (!%p2198_p4)
}
 0xe50   : > { %2107 = dma.vmem_to_hbm [thread:$0]  (%p2110_p6), %s1777_s19, 32, %s2658_s0, [#allocation5]  }
 0xe51   : > { %2207 = dma.done.wait (%p2110_p6), [#allocation5], 32  }
 0xe52   : > { %2209 = vsyncadd (%p2110_p6), [#allocation5], 4294967264 }
 0xe53 PF: > { %s2659_s1 = sld [smem:[#allocation7_spill]] }
 0xe59   : > { %s29_s27 = sadd.s32 1, %s2659_s1  }
 0xe5a   : > { %p26_p5 = scmp.ge.s32.totalorder %s29_s27, 4  }
 0xe5c   :  { %28 = sbr.rel (!%p26_p5) target bundleno = 10 (0xa), region = 160 }
 0xe63   :  { %1789 = vsyncpa [#allocation5], 1 }
 0xe64   :  { %1791 = vsyncpa [#allocation5 + $0x1], 1 }

</bundles_post_ra>
